<compile_context>
chip_gen: v6e
topology: v6e:2x2x1
jax: 0.10.0
libtpu: 0.0.40
codegen_flags: <defaults>
</compile_context>

<pallas_src>
import functools

import jax
import jax.numpy as jnp
from jax.experimental import pallas as pl
from jax.experimental.pallas import tpu as pltpu

LN_EPS = 1e-5  # PyTorch nn.LayerNorm default


def _layernorm(x, gamma, beta):
    mu = jnp.mean(x, axis=-1, keepdims=True)
    var = jnp.mean((x - mu) ** 2, axis=-1, keepdims=True)
    return (x - mu) * jax.lax.rsqrt(var + LN_EPS) * gamma + beta


def _gelu(x):
    # exact (erf-based) GELU, matching torch.nn.GELU() default
    return 0.5 * x * (1.0 + jax.lax.erf(x * 0.7071067811865476))


# ------------------------------ fused kernel --------------------------------

def vit_fused_kernel(
        patches_ref,                                              # (Np, Pd)   f32
        pe_g1_ref, pe_b1_ref, pe_w_ref, pe_b_ref, pe_g2_ref, pe_b2_ref,  # patch embed
        cls_ref, pos_ref,                                         # (1,D), (Np+1,D)
        alg_ref, alb_ref,                                         # attn LN   (1,D)
        wq_ref, wk_ref, wv_ref,                                   # (H,D,dh) bf16 (scale in wq)
        wo_ref, bo_ref,                                           # (H,dh,D) bf16, (1,D)
        flg_ref, flb_ref, w1_ref, b1_ref, w2_ref, b2_ref,         # FFN
        fng_ref, fnb_ref,                                         # final LN
        o_ref,                                                    # (N_pad, D) f32, resident over layers
        *, n_valid):
    layer = pl.program_id(1)
    n_pad, dim = o_ref.shape
    n_patches = patches_ref.shape[0]
    heads = wq_ref.shape[0]

    # ---- layer-0 prologue: patch embed -> +cls token -> +pos embedding (padded) ----
    @pl.when(layer == 0)
    def _init():
        p = _layernorm(patches_ref[...], pe_g1_ref[...], pe_b1_ref[...])
        tok = jnp.dot(p.astype(jnp.bfloat16), pe_w_ref[...],
                      preferred_element_type=jnp.float32) + pe_b_ref[...]
        tok = _layernorm(tok, pe_g2_ref[...], pe_b2_ref[...])
        o_ref[0:1, :] = cls_ref[...] + pos_ref[0:1, :]
        o_ref[1:n_patches + 1, :] = tok + pos_ref[1:n_patches + 1, :]
        if n_pad > n_patches + 1:                                  # static pad rows
            o_ref[n_patches + 1:, :] = jnp.zeros(
                (n_pad - n_patches - 1, dim), jnp.float32)

    x = o_ref[...]                                                 # (N_pad, D) f32

    # ---- attention: heads handled as a leading batch dim of one dot_general ----
    xn = _layernorm(x, alg_ref[...], alb_ref[...]).astype(jnp.bfloat16)
    xb = jnp.broadcast_to(xn[None, :, :], (heads, n_pad, dim))     # (H, N, D) bf16
    q = jnp.einsum('hnd,hde->hne', xb, wq_ref[...],
                   preferred_element_type=jnp.float32)             # scale folded into wq
    k = jnp.einsum('hnd,hde->hne', xb, wk_ref[...],
                   preferred_element_type=jnp.float32)
    v = jnp.einsum('hnd,hde->hne', xb, wv_ref[...],
                   preferred_element_type=jnp.float32)
    dots = jnp.einsum('hnd,hmd->hnm', q.astype(jnp.bfloat16), k.astype(jnp.bfloat16),
                      preferred_element_type=jnp.float32)          # (H, N, N)
    if n_pad > n_valid:                                            # static: mask padded keys
        key_idx = jax.lax.broadcasted_iota(jnp.int32, (heads, n_pad, n_pad), 2)
        dots = jnp.where(key_idx < n_valid, dots, -1e30)
    dots = dots - jnp.max(dots, axis=-1, keepdims=True)
    e = jnp.exp(dots)
    attn = e * pl.reciprocal(jnp.sum(e, axis=-1, keepdims=True), approx=False)
    ctx = jnp.einsum('hnm,hmd->hnd', attn.astype(jnp.bfloat16), v.astype(jnp.bfloat16),
                     preferred_element_type=jnp.float32)           # (H, N, dh)
    per_head = jnp.einsum('hnd,hde->hne', ctx.astype(jnp.bfloat16), wo_ref[...],
                          preferred_element_type=jnp.float32)      # (H, N, D)
    x = x + jnp.sum(per_head, axis=0) + bo_ref[...]                # out-proj + residual

    # ---- feed-forward ----
    xn = _layernorm(x, flg_ref[...], flb_ref[...]).astype(jnp.bfloat16)
    h1 = jnp.dot(xn, w1_ref[...], preferred_element_type=jnp.float32) + b1_ref[...]
    h1 = _gelu(h1)
    y = jnp.dot(h1.astype(jnp.bfloat16), w2_ref[...],
                preferred_element_type=jnp.float32) + b2_ref[...]
    x = x + y

    o_ref[...] = x                                                 # stays resident across layers

    # ---- final LayerNorm of the Transformer on the last layer ----
    @pl.when(layer == pl.num_programs(1) - 1)
    def _final():
        o_ref[...] = _layernorm(x, fng_ref[...], fnb_ref[...])


# ------------------------------- wrapper -------------------------------------

def vit_encoder_forward(img, params, cfg):
    B, C, H, W = img.shape
    p = cfg['patch_size']
    hg, wg = H // p, W // p
    n_patches = hg * wg
    patch_dim = C * p * p
    dim, heads, dh = cfg['dim'], cfg['heads'], cfg['dim_head']
    inner, mlp, depth = heads * dh, cfg['mlp_dim'], cfg['depth']
    scale = dh ** -0.5

    # Rearrange 'b c (h p1) (w p2) -> b (h w) (p1 p2 c)'  (pure layout glue, XLA)
    x = img.reshape(B, C, hg, p, wg, p)
    x = jnp.transpose(x, (0, 2, 4, 3, 5, 1))
    patches = x.reshape(B, n_patches, patch_dim)

    n_valid = n_patches + 1
    n_pad = ((n_valid + 7) // 8) * 8                               # sublane-align the sequence

    bf = lambda a: a.astype(jnp.bfloat16)
    r2 = lambda v: v.reshape(1, -1)
    stack = lambda seq: jnp.stack(list(seq), axis=0)

    pe = params['patch_embed']
    att = [l['attn'] for l in params['layers']]
    ff = [l['ff'] for l in params['layers']]

    def split_qkv(wqkv):                                           # (D, 3*inner) -> 3x (H, D, dh)
        wq, wk, wv = wqkv[:, :inner], wqkv[:, inner:2 * inner], wqkv[:, 2 * inner:]
        per_head = lambda w: jnp.transpose(w.reshape(dim, heads, dh), (1, 0, 2))
        return per_head(wq) * scale, per_head(wk), per_head(wv)    # fold softmax scale into Wq

    wq_l, wk_l, wv_l = zip(*(split_qkv(a['w_qkv']) for a in att))
    a_ln_g = stack(a['ln_g'] for a in att)[:, None, :]
    a_ln_b = stack(a['ln_b'] for a in att)[:, None, :]
    wq_s, wk_s, wv_s = bf(stack(wq_l)), bf(stack(wk_l)), bf(stack(wv_l))      # (depth,H,D,dh)
    wo_s = bf(stack(a['w_out'].reshape(heads, dh, dim) for a in att))         # (depth,H,dh,D)
    bo_s = stack(a['b_out'] for a in att)[:, None, :]
    f_ln_g = stack(f['ln_g'] for f in ff)[:, None, :]
    f_ln_b = stack(f['ln_b'] for f in ff)[:, None, :]
    w1_s = bf(stack(f['w1'] for f in ff))                                     # (depth,D,mlp)
    b1_s = stack(f['b1'] for f in ff)[:, None, :]
    w2_s = bf(stack(f['w2'] for f in ff))                                     # (depth,mlp,D)
    b2_s = stack(f['b2'] for f in ff)[:, None, :]
    fn = params['final_norm']

    sq = pl.Squeezed()
    const = lambda shp: pl.BlockSpec(shp, lambda b, l, _n=len(shp): (0,) * _n)
    perlayer = lambda shp: pl.BlockSpec((sq,) + shp,
                                        lambda b, l, _n=len(shp): (l,) + (0,) * _n)

    out = pl.pallas_call(
        functools.partial(vit_fused_kernel, n_valid=n_valid),
        grid=(B, depth),
        in_specs=[
            pl.BlockSpec((sq, n_patches, patch_dim), lambda b, l: (b, 0, 0)),  # patches
            const((1, patch_dim)), const((1, patch_dim)),                      # pe LN1
            const((patch_dim, dim)), const((1, dim)),                          # pe W, b
            const((1, dim)), const((1, dim)),                                  # pe LN2
            const((1, dim)),                                                   # cls token
            const((n_valid, dim)),                                             # pos embedding
            perlayer((1, dim)), perlayer((1, dim)),                            # attn LN
            perlayer((heads, dim, dh)), perlayer((heads, dim, dh)),            # Wq, Wk
            perlayer((heads, dim, dh)),                                        # Wv
            perlayer((heads, dh, dim)), perlayer((1, dim)),                    # Wout, bout
            perlayer((1, dim)), perlayer((1, dim)),                            # FFN LN
            perlayer((dim, mlp)), perlayer((1, mlp)),                          # W1, b1
            perlayer((mlp, dim)), perlayer((1, dim)),                          # W2, b2
            const((1, dim)), const((1, dim)),                                  # final LN
        ],
        out_specs=pl.BlockSpec((sq, n_pad, dim), lambda b, l: (b, 0, 0)),
        out_shape=jax.ShapeDtypeStruct((B, n_pad, dim), jnp.float32),
        compiler_params=pltpu.CompilerParams(
            dimension_semantics=("parallel", "arbitrary")),
    )(patches,
      r2(pe['ln1_g']), r2(pe['ln1_b']), bf(pe['w']), r2(pe['b']),
      r2(pe['ln2_g']), r2(pe['ln2_b']),
      params['cls_token'].reshape(1, dim),
      params['pos_embedding'].reshape(n_valid, dim),
      a_ln_g, a_ln_b, wq_s, wk_s, wv_s, wo_s, bo_s,
      f_ln_g, f_ln_b, w1_s, b1_s, w2_s, b2_s,
      r2(fn['g']), r2(fn['b']))

    return out[:, 0]   # pool == 'cls'; to_latent is Identity


# ------------------------- deterministic parameters -------------------------

def init_params(key, cfg):
    C, p, dim = cfg['channels'], cfg['patch_size'], cfg['dim']
    patch_dim = C * p * p
    inner = cfg['heads'] * cfg['dim_head']
    num_patches = (cfg['image_size'] // p) ** 2
    keys = iter(jax.random.split(key, 8 + 8 * cfg['depth']))

    def nrm(k, shape, s=0.02):
        return (s * jax.random.normal(k, shape)).astype(jnp.float32)

    params = {
        'patch_embed': {
            'ln1_g': jnp.ones((patch_dim,), jnp.float32),
            'ln1_b': jnp.zeros((patch_dim,), jnp.float32),
            'w': nrm(next(keys), (patch_dim, dim)),
            'b': nrm(next(keys), (dim,)),
            'ln2_g': jnp.ones((dim,), jnp.float32),
            'ln2_b': jnp.zeros((dim,), jnp.float32),
        },
        'pos_embedding': nrm(next(keys), (1, num_patches + 1, dim), 1.0),
        'cls_token': nrm(next(keys), (1, 1, dim), 1.0),
        'layers': [],
        'final_norm': {'g': jnp.ones((dim,), jnp.float32),
                       'b': jnp.zeros((dim,), jnp.float32)},
    }
    for _ in range(cfg['depth']):
        params['layers'].append({
            'attn': {
                'ln_g': jnp.ones((dim,), jnp.float32),
                'ln_b': jnp.zeros((dim,), jnp.float32),
                'w_qkv': nrm(next(keys), (dim, 3 * inner)),   # to_qkv has no bias
                'w_out': nrm(next(keys), (inner, dim)),
                'b_out': nrm(next(keys), (dim,)),
            },
            'ff': {
                'ln_g': jnp.ones((dim,), jnp.float32),
                'ln_b': jnp.zeros((dim,), jnp.float32),
                'w1': nrm(next(keys), (dim, cfg['mlp_dim'])),
                'b1': nrm(next(keys), (cfg['mlp_dim'],)),
                'w2': nrm(next(keys), (cfg['mlp_dim'], dim)),
                'b2': nrm(next(keys), (dim,)),
            },
        })
    return params


# ------------------------------- pure-JAX ref --------------------------------

def reference_forward(img, params, cfg):
    B, C, H, W = img.shape
    p = cfg['patch_size']
    h, w = H // p, W // p
    x = img.reshape(B, C, h, p, w, p).transpose(0, 2, 4, 3, 5, 1).reshape(B, h * w, p * p * C)
    pe = params['patch_embed']
    x = _layernorm(x, pe['ln1_g'], pe['ln1_b']) @ pe['w'] + pe['b']
    x = _layernorm(x, pe['ln2_g'], pe['ln2_b'])
    cls = jnp.broadcast_to(params['cls_token'], (B, 1, cfg['dim']))
    x = jnp.concatenate([cls, x], axis=1)
    x = x + params['pos_embedding'][:, :x.shape[1]]
    heads, dh = cfg['heads'], cfg['dim_head']
    scale, inner = dh ** -0.5, heads * dh
    for layer in params['layers']:
        a = layer['attn']
        xn = _layernorm(x, a['ln_g'], a['ln_b'])
        q, k, v = jnp.split(xn @ a['w_qkv'], 3, axis=-1)
        sh = lambda t: t.reshape(t.shape[0], t.shape[1], heads, dh).transpose(0, 2, 1, 3)
        q, k, v = sh(q), sh(k), sh(v)
        attn = jax.nn.softmax(jnp.einsum('bhnd,bhmd->bhnm', q, k) * scale, axis=-1)
        out = jnp.einsum('bhnm,bhmd->bhnd', attn, v)
        out = out.transpose(0, 2, 1, 3).reshape(x.shape[0], x.shape[1], inner)
        x = out @ a['w_out'] + a['b_out'] + x
        f = layer['ff']
        hdn = _gelu(_layernorm(x, f['ln_g'], f['ln_b']) @ f['w1'] + f['b1'])
        x = hdn @ f['w2'] + f['b2'] + x
    fn = params['final_norm']
    return _layernorm(x, fn['g'], fn['b'])[:, 0]


if __name__ == "__main__":
    cfg = dict(image_size=16, patch_size=8, dim=32, depth=2, heads=4,
               mlp_dim=64, channels=4, dim_head=8, pool='cls')
    key = jax.random.PRNGKey(0)
    k_img, k_par = jax.random.split(key)
    img = jax.random.normal(
        k_img, (2, cfg['channels'], cfg['image_size'], cfg['image_size']), jnp.float32)
    params = init_params(k_par, cfg)

    fwd = jax.jit(lambda im, pr: vit_encoder_forward(im, pr, cfg))
    out = jax.block_until_ready(fwd(img, params))

    ref = reference_forward(img, params, cfg)
    assert out.shape == (2, cfg['dim'])
    # bf16 MXU operands (f32 accumulation) vs pure-f32 reference -> relaxed tolerance
    max_err = float(jnp.max(jnp.abs(out - ref)))
    assert jnp.allclose(out, ref, atol=2e-2, rtol=2e-2), max_err
    print("KERNEL_OK")
</pallas_src>

<mosaic_0001>
module attributes {stable_mosaic.version = 11 : i64} {
  func.func @vit_fused_kernel(%arg0: i32, %arg1: i32, %arg2: memref<1x4x256xf32, #tpu.memory_space<vmem>>, %arg3: memref<1x256xf32, #tpu.memory_space<vmem>>, %arg4: memref<1x256xf32, #tpu.memory_space<vmem>>, %arg5: memref<256x32xbf16, #tpu.memory_space<vmem>>, %arg6: memref<1x32xf32, #tpu.memory_space<vmem>>, %arg7: memref<1x32xf32, #tpu.memory_space<vmem>>, %arg8: memref<1x32xf32, #tpu.memory_space<vmem>>, %arg9: memref<1x32xf32, #tpu.memory_space<vmem>>, %arg10: memref<5x32xf32, #tpu.memory_space<vmem>>, %arg11: memref<1x1x32xf32, #tpu.memory_space<vmem>>, %arg12: memref<1x1x32xf32, #tpu.memory_space<vmem>>, %arg13: memref<1x4x32x8xbf16, #tpu.memory_space<vmem>>, %arg14: memref<1x4x32x8xbf16, #tpu.memory_space<vmem>>, %arg15: memref<1x4x32x8xbf16, #tpu.memory_space<vmem>>, %arg16: memref<1x4x8x32xbf16, #tpu.memory_space<vmem>>, %arg17: memref<1x1x32xf32, #tpu.memory_space<vmem>>, %arg18: memref<1x1x32xf32, #tpu.memory_space<vmem>>, %arg19: memref<1x1x32xf32, #tpu.memory_space<vmem>>, %arg20: memref<1x32x64xbf16, #tpu.memory_space<vmem>>, %arg21: memref<1x1x64xf32, #tpu.memory_space<vmem>>, %arg22: memref<1x64x32xbf16, #tpu.memory_space<vmem>>, %arg23: memref<1x1x32xf32, #tpu.memory_space<vmem>>, %arg24: memref<1x32xf32, #tpu.memory_space<vmem>>, %arg25: memref<1x32xf32, #tpu.memory_space<vmem>>, %arg26: memref<1x8x32xf32, #tpu.memory_space<vmem>>) attributes {dimension_semantics = [#tpu.dimension_semantics<parallel>, #tpu.dimension_semantics<arbitrary>], iteration_bounds = array<i64: 2, 2>, scalar_prefetch = 0 : i64, scratch_operands = 0 : i64, tpu.core_type = #tpu.core_type<tc>, window_params = [{transform_indices = @transform_0, window_bounds = array<i64: 1, 4, 256>}, {pipeline_mode = #tpu.pipeline_mode<synchronous>, transform_indices = @transform_1, window_bounds = array<i64: 1, 256>}, {pipeline_mode = #tpu.pipeline_mode<synchronous>, transform_indices = @transform_2, window_bounds = array<i64: 1, 256>}, {pipeline_mode = #tpu.pipeline_mode<synchronous>, transform_indices = @transform_3, window_bounds = array<i64: 256, 32>}, {pipeline_mode = #tpu.pipeline_mode<synchronous>, transform_indices = @transform_4, window_bounds = array<i64: 1, 32>}, {pipeline_mode = #tpu.pipeline_mode<synchronous>, transform_indices = @transform_5, window_bounds = array<i64: 1, 32>}, {pipeline_mode = #tpu.pipeline_mode<synchronous>, transform_indices = @transform_6, window_bounds = array<i64: 1, 32>}, {pipeline_mode = #tpu.pipeline_mode<synchronous>, transform_indices = @transform_7, window_bounds = array<i64: 1, 32>}, {pipeline_mode = #tpu.pipeline_mode<synchronous>, transform_indices = @transform_8, window_bounds = array<i64: 5, 32>}, {transform_indices = @transform_9, window_bounds = array<i64: 1, 1, 32>}, {transform_indices = @transform_10, window_bounds = array<i64: 1, 1, 32>}, {transform_indices = @transform_11, window_bounds = array<i64: 1, 4, 32, 8>}, {transform_indices = @transform_12, window_bounds = array<i64: 1, 4, 32, 8>}, {transform_indices = @transform_13, window_bounds = array<i64: 1, 4, 32, 8>}, {transform_indices = @transform_14, window_bounds = array<i64: 1, 4, 8, 32>}, {transform_indices = @transform_15, window_bounds = array<i64: 1, 1, 32>}, {transform_indices = @transform_16, window_bounds = array<i64: 1, 1, 32>}, {transform_indices = @transform_17, window_bounds = array<i64: 1, 1, 32>}, {transform_indices = @transform_18, window_bounds = array<i64: 1, 32, 64>}, {transform_indices = @transform_19, window_bounds = array<i64: 1, 1, 64>}, {transform_indices = @transform_20, window_bounds = array<i64: 1, 64, 32>}, {transform_indices = @transform_21, window_bounds = array<i64: 1, 1, 32>}, {pipeline_mode = #tpu.pipeline_mode<synchronous>, transform_indices = @transform_22, window_bounds = array<i64: 1, 32>}, {pipeline_mode = #tpu.pipeline_mode<synchronous>, transform_indices = @transform_23, window_bounds = array<i64: 1, 32>}, {transform_indices = @transform_24, window_bounds = array<i64: 1, 8, 32>}]} {
    %c0_i32 = arith.constant 0 : i32
    %0 = arith.cmpi eq, %arg1, %c0_i32 : i32
    %1 = arith.extui %0 : i1 to i32
    %c0_i32_0 = arith.constant 0 : i32
    %2 = arith.cmpi ne, %1, %c0_i32_0 : i32
    scf.if %2 {
      %c0_74 = arith.constant 0 : index
      %c0_75 = arith.constant 0 : index
      %c0_76 = arith.constant 0 : index
      %132 = vector.load %arg2[%c0_74, %c0_75, %c0_76] : memref<1x4x256xf32, #tpu.memory_space<vmem>>, vector<1x4x256xf32>
      %133 = vector.shape_cast %132 : vector<1x4x256xf32> to vector<4x256xf32>
      %c0_77 = arith.constant 0 : index
      %c0_78 = arith.constant 0 : index
      %134 = vector.load %arg3[%c0_77, %c0_78] : memref<1x256xf32, #tpu.memory_space<vmem>>, vector<1x256xf32>
      %c0_79 = arith.constant 0 : index
      %c0_80 = arith.constant 0 : index
      %135 = vector.load %arg4[%c0_79, %c0_80] : memref<1x256xf32, #tpu.memory_space<vmem>>, vector<1x256xf32>
      %cst_81 = arith.constant dense<0.000000e+00> : vector<4xf32>
      %136 = vector.multi_reduction <add>, %133, %cst_81 [1] : vector<4x256xf32> to vector<4xf32>
      %137 = vector.shape_cast %136 : vector<4xf32> to vector<4x1xf32>
      %cst_82 = arith.constant 2.560000e+02 : f32
      %138 = vector.broadcast %cst_82 : f32 to vector<4x1xf32>
      %139 = arith.divf %137, %138 : vector<4x1xf32>
      %140 = vector.broadcast %139 : vector<4x1xf32> to vector<4x256xf32>
      %141 = arith.subf %133, %140 : vector<4x256xf32>
      %142 = arith.mulf %141, %141 : vector<4x256xf32>
      %cst_83 = arith.constant dense<0.000000e+00> : vector<4xf32>
      %143 = vector.multi_reduction <add>, %142, %cst_83 [1] : vector<4x256xf32> to vector<4xf32>
      %144 = vector.shape_cast %143 : vector<4xf32> to vector<4x1xf32>
      %cst_84 = arith.constant 2.560000e+02 : f32
      %145 = vector.broadcast %cst_84 : f32 to vector<4x1xf32>
      %146 = arith.divf %144, %145 : vector<4x1xf32>
      %147 = vector.broadcast %139 : vector<4x1xf32> to vector<4x256xf32>
      %148 = arith.subf %133, %147 : vector<4x256xf32>
      %cst_85 = arith.constant 9.99999974E-6 : f32
      %149 = vector.broadcast %cst_85 : f32 to vector<4x1xf32>
      %150 = arith.addf %146, %149 : vector<4x1xf32>
      %151 = math.rsqrt %150 : vector<4x1xf32>
      %152 = vector.broadcast %151 : vector<4x1xf32> to vector<4x256xf32>
      %153 = arith.mulf %148, %152 : vector<4x256xf32>
      %154 = vector.broadcast %134 : vector<1x256xf32> to vector<4x256xf32>
      %155 = arith.mulf %153, %154 : vector<4x256xf32>
      %156 = vector.broadcast %135 : vector<1x256xf32> to vector<4x256xf32>
      %157 = arith.addf %155, %156 : vector<4x256xf32>
      %158 = arith.truncf %157 : vector<4x256xf32> to vector<4x256xbf16>
      %c0_86 = arith.constant 0 : index
      %c0_87 = arith.constant 0 : index
      %159 = vector.load %arg5[%c0_86, %c0_87] : memref<256x32xbf16, #tpu.memory_space<vmem>>, vector<256x32xbf16>
      %cst_88 = arith.constant dense<0.000000e+00> : vector<4x32xf32>
      %160 = tpu.matmul %158, %159, %cst_88 {dimension_numbers = #tpu.dot_dimension_numbers<[1], [0], [0], [1], [0, 0, 1, 1], [], []>} : vector<4x256xbf16>, vector<256x32xbf16>, vector<4x32xf32> -> vector<4x32xf32>
      %c0_89 = arith.constant 0 : index
      %c0_90 = arith.constant 0 : index
      %161 = vector.load %arg6[%c0_89, %c0_90] : memref<1x32xf32, #tpu.memory_space<vmem>>, vector<1x32xf32>
      %162 = vector.broadcast %161 : vector<1x32xf32> to vector<4x32xf32>
      %163 = arith.addf %160, %162 : vector<4x32xf32>
      %c0_91 = arith.constant 0 : index
      %c0_92 = arith.constant 0 : index
      %164 = vector.load %arg7[%c0_91, %c0_92] : memref<1x32xf32, #tpu.memory_space<vmem>>, vector<1x32xf32>
      %c0_93 = arith.constant 0 : index
      %c0_94 = arith.constant 0 : index
      %165 = vector.load %arg8[%c0_93, %c0_94] : memref<1x32xf32, #tpu.memory_space<vmem>>, vector<1x32xf32>
      %cst_95 = arith.constant dense<0.000000e+00> : vector<4xf32>
      %166 = vector.multi_reduction <add>, %163, %cst_95 [1] : vector<4x32xf32> to vector<4xf32>
      %167 = vector.shape_cast %166 : vector<4xf32> to vector<4x1xf32>
      %cst_96 = arith.constant 3.200000e+01 : f32
      %168 = vector.broadcast %cst_96 : f32 to vector<4x1xf32>
      %169 = arith.divf %167, %168 : vector<4x1xf32>
      %170 = vector.broadcast %169 : vector<4x1xf32> to vector<4x32xf32>
      %171 = arith.subf %163, %170 : vector<4x32xf32>
      %172 = arith.mulf %171, %171 : vector<4x32xf32>
      %cst_97 = arith.constant dense<0.000000e+00> : vector<4xf32>
      %173 = vector.multi_reduction <add>, %172, %cst_97 [1] : vector<4x32xf32> to vector<4xf32>
      %174 = vector.shape_cast %173 : vector<4xf32> to vector<4x1xf32>
      %cst_98 = arith.constant 3.200000e+01 : f32
      %175 = vector.broadcast %cst_98 : f32 to vector<4x1xf32>
      %176 = arith.divf %174, %175 : vector<4x1xf32>
      %177 = vector.broadcast %169 : vector<4x1xf32> to vector<4x32xf32>
      %178 = arith.subf %163, %177 : vector<4x32xf32>
      %cst_99 = arith.constant 9.99999974E-6 : f32
      %179 = vector.broadcast %cst_99 : f32 to vector<4x1xf32>
      %180 = arith.addf %176, %179 : vector<4x1xf32>
      %181 = math.rsqrt %180 : vector<4x1xf32>
      %182 = vector.broadcast %181 : vector<4x1xf32> to vector<4x32xf32>
      %183 = arith.mulf %178, %182 : vector<4x32xf32>
      %184 = vector.broadcast %164 : vector<1x32xf32> to vector<4x32xf32>
      %185 = arith.mulf %183, %184 : vector<4x32xf32>
      %186 = vector.broadcast %165 : vector<1x32xf32> to vector<4x32xf32>
      %187 = arith.addf %185, %186 : vector<4x32xf32>
      %c0_100 = arith.constant 0 : index
      %c0_101 = arith.constant 0 : index
      %188 = vector.load %arg9[%c0_100, %c0_101] : memref<1x32xf32, #tpu.memory_space<vmem>>, vector<1x32xf32>
      %c0_102 = arith.constant 0 : index
      %c0_103 = arith.constant 0 : index
      %189 = vector.load %arg10[%c0_102, %c0_103] : memref<5x32xf32, #tpu.memory_space<vmem>>, vector<1x32xf32>
      %190 = arith.addf %188, %189 : vector<1x32xf32>
      %c0_104 = arith.constant 0 : index
      %c0_105 = arith.constant 0 : index
      %c0_106 = arith.constant 0 : index
      %191 = vector.load %arg26[%c0_104, %c0_105, %c0_106] : memref<1x8x32xf32, #tpu.memory_space<vmem>>, vector<1x1x32xf32>
      %192 = vector.shape_cast %191 : vector<1x1x32xf32> to vector<1x32xf32>
      %193 = vector.shape_cast %190 : vector<1x32xf32> to vector<1x1x32xf32>
      tpu.vector_store %arg26[%c0_104, %c0_105, %c0_106], %193 {strides = array<i32>} : memref<1x8x32xf32, #tpu.memory_space<vmem>>, vector<1x1x32xf32>,
      %c1 = arith.constant 1 : index
      %c0_107 = arith.constant 0 : index
      %194 = vector.load %arg10[%c1, %c0_107] : memref<5x32xf32, #tpu.memory_space<vmem>>, vector<4x32xf32>
      %195 = arith.addf %187, %194 : vector<4x32xf32>
      %c0_108 = arith.constant 0 : index
      %c1_109 = arith.constant 1 : index
      %c0_110 = arith.constant 0 : index
      %196 = vector.load %arg26[%c0_108, %c1_109, %c0_110] : memref<1x8x32xf32, #tpu.memory_space<vmem>>, vector<1x4x32xf32>
      %197 = vector.shape_cast %196 : vector<1x4x32xf32> to vector<4x32xf32>
      %198 = vector.shape_cast %195 : vector<4x32xf32> to vector<1x4x32xf32>
      tpu.vector_store %arg26[%c0_108, %c1_109, %c0_110], %198 {strides = array<i32>} : memref<1x8x32xf32, #tpu.memory_space<vmem>>, vector<1x4x32xf32>,
      %cst_111 = arith.constant 0.000000e+00 : f32
      %199 = vector.broadcast %cst_111 : f32 to vector<3x32xf32>
      %c0_112 = arith.constant 0 : index
      %c5 = arith.constant 5 : index
      %c0_113 = arith.constant 0 : index
      %200 = vector.load %arg26[%c0_112, %c5, %c0_113] : memref<1x8x32xf32, #tpu.memory_space<vmem>>, vector<1x3x32xf32>
      %201 = vector.shape_cast %200 : vector<1x3x32xf32> to vector<3x32xf32>
      %202 = vector.shape_cast %199 : vector<3x32xf32> to vector<1x3x32xf32>
      tpu.vector_store %arg26[%c0_112, %c5, %c0_113], %202 {strides = array<i32>} : memref<1x8x32xf32, #tpu.memory_space<vmem>>, vector<1x3x32xf32>,
    } else {
    }
    %c0 = arith.constant 0 : index
    %c0_1 = arith.constant 0 : index
    %c0_2 = arith.constant 0 : index
    %3 = vector.load %arg26[%c0, %c0_1, %c0_2] : memref<1x8x32xf32, #tpu.memory_space<vmem>>, vector<1x8x32xf32>
    %4 = vector.shape_cast %3 : vector<1x8x32xf32> to vector<8x32xf32>
    %c0_3 = arith.constant 0 : index
    %c0_4 = arith.constant 0 : index
    %c0_5 = arith.constant 0 : index
    %5 = vector.load %arg11[%c0_3, %c0_4, %c0_5] : memref<1x1x32xf32, #tpu.memory_space<vmem>>, vector<1x1x32xf32>
    %6 = vector.shape_cast %5 : vector<1x1x32xf32> to vector<1x32xf32>
    %c0_6 = arith.constant 0 : index
    %c0_7 = arith.constant 0 : index
    %c0_8 = arith.constant 0 : index
    %7 = vector.load %arg12[%c0_6, %c0_7, %c0_8] : memref<1x1x32xf32, #tpu.memory_space<vmem>>, vector<1x1x32xf32>
    %8 = vector.shape_cast %7 : vector<1x1x32xf32> to vector<1x32xf32>
    %cst = arith.constant dense<0.000000e+00> : vector<8xf32>
    %9 = vector.multi_reduction <add>, %4, %cst [1] : vector<8x32xf32> to vector<8xf32>
    %10 = vector.shape_cast %9 : vector<8xf32> to vector<8x1xf32>
    %cst_9 = arith.constant 3.200000e+01 : f32
    %11 = vector.broadcast %cst_9 : f32 to vector<8x1xf32>
    %12 = arith.divf %10, %11 : vector<8x1xf32>
    %13 = vector.broadcast %12 : vector<8x1xf32> to vector<8x32xf32>
    %14 = arith.subf %4, %13 : vector<8x32xf32>
    %15 = arith.mulf %14, %14 : vector<8x32xf32>
    %cst_10 = arith.constant dense<0.000000e+00> : vector<8xf32>
    %16 = vector.multi_reduction <add>, %15, %cst_10 [1] : vector<8x32xf32> to vector<8xf32>
    %17 = vector.shape_cast %16 : vector<8xf32> to vector<8x1xf32>
    %cst_11 = arith.constant 3.200000e+01 : f32
    %18 = vector.broadcast %cst_11 : f32 to vector<8x1xf32>
    %19 = arith.divf %17, %18 : vector<8x1xf32>
    %20 = vector.broadcast %12 : vector<8x1xf32> to vector<8x32xf32>
    %21 = arith.subf %4, %20 : vector<8x32xf32>
    %cst_12 = arith.constant 9.99999974E-6 : f32
    %22 = vector.broadcast %cst_12 : f32 to vector<8x1xf32>
    %23 = arith.addf %19, %22 : vector<8x1xf32>
    %24 = math.rsqrt %23 : vector<8x1xf32>
    %25 = vector.broadcast %24 : vector<8x1xf32> to vector<8x32xf32>
    %26 = arith.mulf %21, %25 : vector<8x32xf32>
    %27 = vector.broadcast %6 : vector<1x32xf32> to vector<8x32xf32>
    %28 = arith.mulf %26, %27 : vector<8x32xf32>
    %29 = vector.broadcast %8 : vector<1x32xf32> to vector<8x32xf32>
    %30 = arith.addf %28, %29 : vector<8x32xf32>
    %31 = arith.truncf %30 : vector<8x32xf32> to vector<8x32xbf16>
    %32 = vector.shape_cast %31 : vector<8x32xbf16> to vector<1x8x32xbf16>
    %33 = vector.shape_cast %32 : vector<1x8x32xbf16> to vector<1x8x32xbf16>
    %34 = vector.broadcast %33 : vector<1x8x32xbf16> to vector<4x8x32xbf16>
    %c0_13 = arith.constant 0 : index
    %c0_14 = arith.constant 0 : index
    %c0_15 = arith.constant 0 : index
    %c0_16 = arith.constant 0 : index
    %35 = vector.load %arg13[%c0_13, %c0_14, %c0_15, %c0_16] : memref<1x4x32x8xbf16, #tpu.memory_space<vmem>>, vector<1x4x32x8xbf16>
    %36 = vector.shape_cast %35 : vector<1x4x32x8xbf16> to vector<4x32x8xbf16>
    "tpu.trace_start"() <{level = 10 : i32, message = "hnd,hde->hne"}> : () -> ()
    %cst_17 = arith.constant dense<0.000000e+00> : vector<4x8x8xf32>
    %37 = tpu.matmul %34, %36, %cst_17 {dimension_numbers = #tpu.dot_dimension_numbers<[2], [1], [1], [2], [0, 0, 0, 1, 1, 2], [0], [0]>} : vector<4x8x32xbf16>, vector<4x32x8xbf16>, vector<4x8x8xf32> -> vector<4x8x8xf32>
    "tpu.trace_stop"() : () -> ()
    %c0_18 = arith.constant 0 : index
    %c0_19 = arith.constant 0 : index
    %c0_20 = arith.constant 0 : index
    %c0_21 = arith.constant 0 : index
    %38 = vector.load %arg14[%c0_18, %c0_19, %c0_20, %c0_21] : memref<1x4x32x8xbf16, #tpu.memory_space<vmem>>, vector<1x4x32x8xbf16>
    %39 = vector.shape_cast %38 : vector<1x4x32x8xbf16> to vector<4x32x8xbf16>
    "tpu.trace_start"() <{level = 10 : i32, message = "hnd,hde->hne"}> : () -> ()
    %cst_22 = arith.constant dense<0.000000e+00> : vector<4x8x8xf32>
    %40 = tpu.matmul %34, %39, %cst_22 {dimension_numbers = #tpu.dot_dimension_numbers<[2], [1], [1], [2], [0, 0, 0, 1, 1, 2], [0], [0]>} : vector<4x8x32xbf16>, vector<4x32x8xbf16>, vector<4x8x8xf32> -> vector<4x8x8xf32>
    "tpu.trace_stop"() : () -> ()
    %c0_23 = arith.constant 0 : index
    %c0_24 = arith.constant 0 : index
    %c0_25 = arith.constant 0 : index
    %c0_26 = arith.constant 0 : index
    %41 = vector.load %arg15[%c0_23, %c0_24, %c0_25, %c0_26] : memref<1x4x32x8xbf16, #tpu.memory_space<vmem>>, vector<1x4x32x8xbf16>
    %42 = vector.shape_cast %41 : vector<1x4x32x8xbf16> to vector<4x32x8xbf16>
    "tpu.trace_start"() <{level = 10 : i32, message = "hnd,hde->hne"}> : () -> ()
    %cst_27 = arith.constant dense<0.000000e+00> : vector<4x8x8xf32>
    %43 = tpu.matmul %34, %42, %cst_27 {dimension_numbers = #tpu.dot_dimension_numbers<[2], [1], [1], [2], [0, 0, 0, 1, 1, 2], [0], [0]>} : vector<4x8x32xbf16>, vector<4x32x8xbf16>, vector<4x8x8xf32> -> vector<4x8x8xf32>
    "tpu.trace_stop"() : () -> ()
    %44 = arith.truncf %37 : vector<4x8x8xf32> to vector<4x8x8xbf16>
    %45 = arith.truncf %40 : vector<4x8x8xf32> to vector<4x8x8xbf16>
    "tpu.trace_start"() <{level = 10 : i32, message = "hnd,hmd->hnm"}> : () -> ()
    %cst_28 = arith.constant dense<0.000000e+00> : vector<4x8x8xf32>
    %46 = tpu.matmul %44, %45, %cst_28 {dimension_numbers = #tpu.dot_dimension_numbers<[2], [2], [1], [1], [0, 0, 0, 1, 1, 1], [0], [0]>} : vector<4x8x8xbf16>, vector<4x8x8xbf16>, vector<4x8x8xf32> -> vector<4x8x8xf32>
    "tpu.trace_stop"() : () -> ()
    %47 = tpu.iota {dimensions = array<i32: 2>} : vector<4x8x8xi32>
    %c5_i32 = arith.constant 5 : i32
    %48 = vector.broadcast %c5_i32 : i32 to vector<4x8x8xi32>
    %49 = arith.cmpi slt, %47, %48 : vector<4x8x8xi32>
    %cst_29 = arith.constant -1.000000e+30 : f32
    %50 = vector.broadcast %cst_29 : f32 to vector<4x8x8xf32>
    %51 = arith.select %49, %46, %50 : vector<4x8x8xi1>, vector<4x8x8xf32>
    %cst_30 = arith.constant dense<0xFF800000> : vector<4x8xf32>
    %52 = vector.multi_reduction <maximumf>, %51, %cst_30 [2] : vector<4x8x8xf32> to vector<4x8xf32>
    %53 = vector.shape_cast %52 : vector<4x8xf32> to vector<4x8x1xf32>
    %54 = vector.broadcast %53 : vector<4x8x1xf32> to vector<4x8x8xf32>
    %55 = arith.subf %51, %54 : vector<4x8x8xf32>
    %56 = math.exp %55 : vector<4x8x8xf32>
    %cst_31 = arith.constant dense<0.000000e+00> : vector<4x8xf32>
    %57 = vector.multi_reduction <add>, %56, %cst_31 [2] : vector<4x8x8xf32> to vector<4x8xf32>
    %58 = vector.shape_cast %57 : vector<4x8xf32> to vector<4x8x1xf32>
    %59 = tpu.reciprocal %58 : vector<4x8x1xf32> -> vector<4x8x1xf32>
    %60 = vector.broadcast %59 : vector<4x8x1xf32> to vector<4x8x8xf32>
    %61 = arith.mulf %56, %60 : vector<4x8x8xf32>
    %62 = arith.truncf %61 : vector<4x8x8xf32> to vector<4x8x8xbf16>
    %63 = arith.truncf %43 : vector<4x8x8xf32> to vector<4x8x8xbf16>
    "tpu.trace_start"() <{level = 10 : i32, message = "hnm,hmd->hnd"}> : () -> ()
    %cst_32 = arith.constant dense<0.000000e+00> : vector<4x8x8xf32>
    %64 = tpu.matmul %62, %63, %cst_32 {dimension_numbers = #tpu.dot_dimension_numbers<[2], [1], [1], [2], [0, 0, 0, 1, 1, 2], [0], [0]>} : vector<4x8x8xbf16>, vector<4x8x8xbf16>, vector<4x8x8xf32> -> vector<4x8x8xf32>
    "tpu.trace_stop"() : () -> ()
    %65 = arith.truncf %64 : vector<4x8x8xf32> to vector<4x8x8xbf16>
    %c0_33 = arith.constant 0 : index
    %c0_34 = arith.constant 0 : index
    %c0_35 = arith.constant 0 : index
    %c0_36 = arith.constant 0 : index
    %66 = vector.load %arg16[%c0_33, %c0_34, %c0_35, %c0_36] : memref<1x4x8x32xbf16, #tpu.memory_space<vmem>>, vector<1x4x8x32xbf16>
    %67 = vector.shape_cast %66 : vector<1x4x8x32xbf16> to vector<4x8x32xbf16>
    "tpu.trace_start"() <{level = 10 : i32, message = "hnd,hde->hne"}> : () -> ()
    %cst_37 = arith.constant dense<0.000000e+00> : vector<4x8x32xf32>
    %68 = tpu.matmul %65, %67, %cst_37 {dimension_numbers = #tpu.dot_dimension_numbers<[2], [1], [1], [2], [0, 0, 0, 1, 1, 2], [0], [0]>} : vector<4x8x8xbf16>, vector<4x8x32xbf16>, vector<4x8x32xf32> -> vector<4x8x32xf32>
    "tpu.trace_stop"() : () -> ()
    %cst_38 = arith.constant dense<0.000000e+00> : vector<8x32xf32>
    %69 = vector.multi_reduction <add>, %68, %cst_38 [0] : vector<4x8x32xf32> to vector<8x32xf32>
    %70 = arith.addf %4, %69 : vector<8x32xf32>
    %c0_39 = arith.constant 0 : index
    %c0_40 = arith.constant 0 : index
    %c0_41 = arith.constant 0 : index
    %71 = vector.load %arg17[%c0_39, %c0_40, %c0_41] : memref<1x1x32xf32, #tpu.memory_space<vmem>>, vector<1x1x32xf32>
    %72 = vector.shape_cast %71 : vector<1x1x32xf32> to vector<1x32xf32>
    %73 = vector.broadcast %72 : vector<1x32xf32> to vector<8x32xf32>
    %74 = arith.addf %70, %73 : vector<8x32xf32>
    %c0_42 = arith.constant 0 : index
    %c0_43 = arith.constant 0 : index
    %c0_44 = arith.constant 0 : index
    %75 = vector.load %arg18[%c0_42, %c0_43, %c0_44] : memref<1x1x32xf32, #tpu.memory_space<vmem>>, vector<1x1x32xf32>
    %76 = vector.shape_cast %75 : vector<1x1x32xf32> to vector<1x32xf32>
    %c0_45 = arith.constant 0 : index
    %c0_46 = arith.constant 0 : index
    %c0_47 = arith.constant 0 : index
    %77 = vector.load %arg19[%c0_45, %c0_46, %c0_47] : memref<1x1x32xf32, #tpu.memory_space<vmem>>, vector<1x1x32xf32>
    %78 = vector.shape_cast %77 : vector<1x1x32xf32> to vector<1x32xf32>
    %cst_48 = arith.constant dense<0.000000e+00> : vector<8xf32>
    %79 = vector.multi_reduction <add>, %74, %cst_48 [1] : vector<8x32xf32> to vector<8xf32>
    %80 = vector.shape_cast %79 : vector<8xf32> to vector<8x1xf32>
    %cst_49 = arith.constant 3.200000e+01 : f32
    %81 = vector.broadcast %cst_49 : f32 to vector<8x1xf32>
    %82 = arith.divf %80, %81 : vector<8x1xf32>
    %83 = vector.broadcast %82 : vector<8x1xf32> to vector<8x32xf32>
    %84 = arith.subf %74, %83 : vector<8x32xf32>
    %85 = arith.mulf %84, %84 : vector<8x32xf32>
    %cst_50 = arith.constant dense<0.000000e+00> : vector<8xf32>
    %86 = vector.multi_reduction <add>, %85, %cst_50 [1] : vector<8x32xf32> to vector<8xf32>
    %87 = vector.shape_cast %86 : vector<8xf32> to vector<8x1xf32>
    %cst_51 = arith.constant 3.200000e+01 : f32
    %88 = vector.broadcast %cst_51 : f32 to vector<8x1xf32>
    %89 = arith.divf %87, %88 : vector<8x1xf32>
    %90 = vector.broadcast %82 : vector<8x1xf32> to vector<8x32xf32>
    %91 = arith.subf %74, %90 : vector<8x32xf32>
    %cst_52 = arith.constant 9.99999974E-6 : f32
    %92 = vector.broadcast %cst_52 : f32 to vector<8x1xf32>
    %93 = arith.addf %89, %92 : vector<8x1xf32>
    %94 = math.rsqrt %93 : vector<8x1xf32>
    %95 = vector.broadcast %94 : vector<8x1xf32> to vector<8x32xf32>
    %96 = arith.mulf %91, %95 : vector<8x32xf32>
    %97 = vector.broadcast %76 : vector<1x32xf32> to vector<8x32xf32>
    %98 = arith.mulf %96, %97 : vector<8x32xf32>
    %99 = vector.broadcast %78 : vector<1x32xf32> to vector<8x32xf32>
    %100 = arith.addf %98, %99 : vector<8x32xf32>
    %101 = arith.truncf %100 : vector<8x32xf32> to vector<8x32xbf16>
    %c0_53 = arith.constant 0 : index
    %c0_54 = arith.constant 0 : index
    %c0_55 = arith.constant 0 : index
    %102 = vector.load %arg20[%c0_53, %c0_54, %c0_55] : memref<1x32x64xbf16, #tpu.memory_space<vmem>>, vector<1x32x64xbf16>
    %103 = vector.shape_cast %102 : vector<1x32x64xbf16> to vector<32x64xbf16>
    %cst_56 = arith.constant dense<0.000000e+00> : vector<8x64xf32>
    %104 = tpu.matmul %101, %103, %cst_56 {dimension_numbers = #tpu.dot_dimension_numbers<[1], [0], [0], [1], [0, 0, 1, 1], [], []>} : vector<8x32xbf16>, vector<32x64xbf16>, vector<8x64xf32> -> vector<8x64xf32>
    %c0_57 = arith.constant 0 : index
    %c0_58 = arith.constant 0 : index
    %c0_59 = arith.constant 0 : index
    %105 = vector.load %arg21[%c0_57, %c0_58, %c0_59] : memref<1x1x64xf32, #tpu.memory_space<vmem>>, vector<1x1x64xf32>
    %106 = vector.shape_cast %105 : vector<1x1x64xf32> to vector<1x64xf32>
    %107 = vector.broadcast %106 : vector<1x64xf32> to vector<8x64xf32>
    %108 = arith.addf %104, %107 : vector<8x64xf32>
    %cst_60 = arith.constant 5.000000e-01 : f32
    %109 = vector.broadcast %cst_60 : f32 to vector<8x64xf32>
    %110 = arith.mulf %109, %108 : vector<8x64xf32>
    %cst_61 = arith.constant 0.707106769 : f32
    %111 = vector.broadcast %cst_61 : f32 to vector<8x64xf32>
    %112 = arith.mulf %108, %111 : vector<8x64xf32>
    %113 = math.erf %112 : vector<8x64xf32>
    %cst_62 = arith.constant 1.000000e+00 : f32
    %114 = vector.broadcast %cst_62 : f32 to vector<8x64xf32>
    %115 = arith.addf %114, %113 : vector<8x64xf32>
    %116 = arith.mulf %110, %115 : vector<8x64xf32>
    %117 = arith.truncf %116 : vector<8x64xf32> to vector<8x64xbf16>
    %c0_63 = arith.constant 0 : index
    %c0_64 = arith.constant 0 : index
    %c0_65 = arith.constant 0 : index
    %118 = vector.load %arg22[%c0_63, %c0_64, %c0_65] : memref<1x64x32xbf16, #tpu.memory_space<vmem>>, vector<1x64x32xbf16>
    %119 = vector.shape_cast %118 : vector<1x64x32xbf16> to vector<64x32xbf16>
    %cst_66 = arith.constant dense<0.000000e+00> : vector<8x32xf32>
    %120 = tpu.matmul %117, %119, %cst_66 {dimension_numbers = #tpu.dot_dimension_numbers<[1], [0], [0], [1], [0, 0, 1, 1], [], []>} : vector<8x64xbf16>, vector<64x32xbf16>, vector<8x32xf32> -> vector<8x32xf32>
    %c0_67 = arith.constant 0 : index
    %c0_68 = arith.constant 0 : index
    %c0_69 = arith.constant 0 : index
    %121 = vector.load %arg23[%c0_67, %c0_68, %c0_69] : memref<1x1x32xf32, #tpu.memory_space<vmem>>, vector<1x1x32xf32>
    %122 = vector.shape_cast %121 : vector<1x1x32xf32> to vector<1x32xf32>
    %123 = vector.broadcast %122 : vector<1x32xf32> to vector<8x32xf32>
    %124 = arith.addf %120, %123 : vector<8x32xf32>
    %125 = arith.addf %74, %124 : vector<8x32xf32>
    %c0_70 = arith.constant 0 : index
    %c0_71 = arith.constant 0 : index
    %c0_72 = arith.constant 0 : index
    %126 = vector.load %arg26[%c0_70, %c0_71, %c0_72] : memref<1x8x32xf32, #tpu.memory_space<vmem>>, vector<1x8x32xf32>
    %127 = vector.shape_cast %126 : vector<1x8x32xf32> to vector<8x32xf32>
    %128 = vector.shape_cast %125 : vector<8x32xf32> to vector<1x8x32xf32>
    tpu.vector_store %arg26[%c0_70, %c0_71, %c0_72], %128 {strides = array<i32>} : memref<1x8x32xf32, #tpu.memory_space<vmem>>, vector<1x8x32xf32>,
    %c1_i32 = arith.constant 1 : i32
    %129 = arith.cmpi eq, %arg1, %c1_i32 : i32
    %130 = arith.extui %129 : i1 to i32
    %c0_i32_73 = arith.constant 0 : i32
    %131 = arith.cmpi ne, %130, %c0_i32_73 : i32
    scf.if %131 {
      %c0_74 = arith.constant 0 : index
      %c0_75 = arith.constant 0 : index
      %132 = vector.load %arg24[%c0_74, %c0_75] : memref<1x32xf32, #tpu.memory_space<vmem>>, vector<1x32xf32>
      %c0_76 = arith.constant 0 : index
      %c0_77 = arith.constant 0 : index
      %133 = vector.load %arg25[%c0_76, %c0_77] : memref<1x32xf32, #tpu.memory_space<vmem>>, vector<1x32xf32>
      %cst_78 = arith.constant dense<0.000000e+00> : vector<8xf32>
      %134 = vector.multi_reduction <add>, %125, %cst_78 [1] : vector<8x32xf32> to vector<8xf32>
      %135 = vector.shape_cast %134 : vector<8xf32> to vector<8x1xf32>
      %cst_79 = arith.constant 3.200000e+01 : f32
      %136 = vector.broadcast %cst_79 : f32 to vector<8x1xf32>
      %137 = arith.divf %135, %136 : vector<8x1xf32>
      %138 = vector.broadcast %137 : vector<8x1xf32> to vector<8x32xf32>
      %139 = arith.subf %125, %138 : vector<8x32xf32>
      %140 = arith.mulf %139, %139 : vector<8x32xf32>
      %cst_80 = arith.constant dense<0.000000e+00> : vector<8xf32>
      %141 = vector.multi_reduction <add>, %140, %cst_80 [1] : vector<8x32xf32> to vector<8xf32>
      %142 = vector.shape_cast %141 : vector<8xf32> to vector<8x1xf32>
      %cst_81 = arith.constant 3.200000e+01 : f32
      %143 = vector.broadcast %cst_81 : f32 to vector<8x1xf32>
      %144 = arith.divf %142, %143 : vector<8x1xf32>
      %145 = vector.broadcast %137 : vector<8x1xf32> to vector<8x32xf32>
      %146 = arith.subf %125, %145 : vector<8x32xf32>
      %cst_82 = arith.constant 9.99999974E-6 : f32
      %147 = vector.broadcast %cst_82 : f32 to vector<8x1xf32>
      %148 = arith.addf %144, %147 : vector<8x1xf32>
      %149 = math.rsqrt %148 : vector<8x1xf32>
      %150 = vector.broadcast %149 : vector<8x1xf32> to vector<8x32xf32>
      %151 = arith.mulf %146, %150 : vector<8x32xf32>
      %152 = vector.broadcast %132 : vector<1x32xf32> to vector<8x32xf32>
      %153 = arith.mulf %151, %152 : vector<8x32xf32>
      %154 = vector.broadcast %133 : vector<1x32xf32> to vector<8x32xf32>
      %155 = arith.addf %153, %154 : vector<8x32xf32>
      %c0_83 = arith.constant 0 : index
      %c0_84 = arith.constant 0 : index
      %c0_85 = arith.constant 0 : index
      %156 = vector.load %arg26[%c0_83, %c0_84, %c0_85] : memref<1x8x32xf32, #tpu.memory_space<vmem>>, vector<1x8x32xf32>
      %157 = vector.shape_cast %156 : vector<1x8x32xf32> to vector<8x32xf32>
      %158 = vector.shape_cast %155 : vector<8x32xf32> to vector<1x8x32xf32>
      tpu.vector_store %arg26[%c0_83, %c0_84, %c0_85], %158 {strides = array<i32>} : memref<1x8x32xf32, #tpu.memory_space<vmem>>, vector<1x8x32xf32>,
    } else {
    }
    return
  }
  func.func @transform_0(%arg0: i32, %arg1: i32) -> (i32, i32, i32) {
    %c0_i32 = arith.constant 0 : i32
    %c0_i32_0 = arith.constant 0 : i32
    %c0_i32_1 = arith.constant 0 : i32
    return %arg0, %c0_i32, %c0_i32_0 : i32, i32, i32
  }
  func.func @transform_1(%arg0: i32, %arg1: i32) -> (i32, i32) {
    %c0_i32 = arith.constant 0 : i32
    %c0_i32_0 = arith.constant 0 : i32
    %c0_i32_1 = arith.constant 0 : i32
    return %c0_i32, %c0_i32_0 : i32, i32
  }
  func.func @transform_2(%arg0: i32, %arg1: i32) -> (i32, i32) {
    %c0_i32 = arith.constant 0 : i32
    %c0_i32_0 = arith.constant 0 : i32
    %c0_i32_1 = arith.constant 0 : i32
    return %c0_i32, %c0_i32_0 : i32, i32
  }
  func.func @transform_3(%arg0: i32, %arg1: i32) -> (i32, i32) {
    %c0_i32 = arith.constant 0 : i32
    %c0_i32_0 = arith.constant 0 : i32
    %c0_i32_1 = arith.constant 0 : i32
    return %c0_i32, %c0_i32_0 : i32, i32
  }
  func.func @transform_4(%arg0: i32, %arg1: i32) -> (i32, i32) {
    %c0_i32 = arith.constant 0 : i32
    %c0_i32_0 = arith.constant 0 : i32
    %c0_i32_1 = arith.constant 0 : i32
    return %c0_i32, %c0_i32_0 : i32, i32
  }
  func.func @transform_5(%arg0: i32, %arg1: i32) -> (i32, i32) {
    %c0_i32 = arith.constant 0 : i32
    %c0_i32_0 = arith.constant 0 : i32
    %c0_i32_1 = arith.constant 0 : i32
    return %c0_i32, %c0_i32_0 : i32, i32
  }
  func.func @transform_6(%arg0: i32, %arg1: i32) -> (i32, i32) {
    %c0_i32 = arith.constant 0 : i32
    %c0_i32_0 = arith.constant 0 : i32
    %c0_i32_1 = arith.constant 0 : i32
    return %c0_i32, %c0_i32_0 : i32, i32
  }
  func.func @transform_7(%arg0: i32, %arg1: i32) -> (i32, i32) {
    %c0_i32 = arith.constant 0 : i32
    %c0_i32_0 = arith.constant 0 : i32
    %c0_i32_1 = arith.constant 0 : i32
    return %c0_i32, %c0_i32_0 : i32, i32
  }
  func.func @transform_8(%arg0: i32, %arg1: i32) -> (i32, i32) {
    %c0_i32 = arith.constant 0 : i32
    %c0_i32_0 = arith.constant 0 : i32
    %c0_i32_1 = arith.constant 0 : i32
    return %c0_i32, %c0_i32_0 : i32, i32
  }
  func.func @transform_9(%arg0: i32, %arg1: i32) -> (i32, i32, i32) {
    %c0_i32 = arith.constant 0 : i32
    %c0_i32_0 = arith.constant 0 : i32
    %c0_i32_1 = arith.constant 0 : i32
    return %arg1, %c0_i32, %c0_i32_0 : i32, i32, i32
  }
  func.func @transform_10(%arg0: i32, %arg1: i32) -> (i32, i32, i32) {
    %c0_i32 = arith.constant 0 : i32
    %c0_i32_0 = arith.constant 0 : i32
    %c0_i32_1 = arith.constant 0 : i32
    return %arg1, %c0_i32, %c0_i32_0 : i32, i32, i32
  }
  func.func @transform_11(%arg0: i32, %arg1: i32) -> (i32, i32, i32, i32) {
    %c0_i32 = arith.constant 0 : i32
    %c0_i32_0 = arith.constant 0 : i32
    %c0_i32_1 = arith.constant 0 : i32
    %c0_i32_2 = arith.constant 0 : i32
    return %arg1, %c0_i32, %c0_i32_0, %c0_i32_1 : i32, i32, i32, i32
  }
  func.func @transform_12(%arg0: i32, %arg1: i32) -> (i32, i32, i32, i32) {
    %c0_i32 = arith.constant 0 : i32
    %c0_i32_0 = arith.constant 0 : i32
    %c0_i32_1 = arith.constant 0 : i32
    %c0_i32_2 = arith.constant 0 : i32
    return %arg1, %c0_i32, %c0_i32_0, %c0_i32_1 : i32, i32, i32, i32
  }
  func.func @transform_13(%arg0: i32, %arg1: i32) -> (i32, i32, i32, i32) {
    %c0_i32 = arith.constant 0 : i32
    %c0_i32_0 = arith.constant 0 : i32
    %c0_i32_1 = arith.constant 0 : i32
    %c0_i32_2 = arith.constant 0 : i32
    return %arg1, %c0_i32, %c0_i32_0, %c0_i32_1 : i32, i32, i32, i32
  }
  func.func @transform_14(%arg0: i32, %arg1: i32) -> (i32, i32, i32, i32) {
    %c0_i32 = arith.constant 0 : i32
    %c0_i32_0 = arith.constant 0 : i32
    %c0_i32_1 = arith.constant 0 : i32
    %c0_i32_2 = arith.constant 0 : i32
    return %arg1, %c0_i32, %c0_i32_0, %c0_i32_1 : i32, i32, i32, i32
  }
  func.func @transform_15(%arg0: i32, %arg1: i32) -> (i32, i32, i32) {
    %c0_i32 = arith.constant 0 : i32
    %c0_i32_0 = arith.constant 0 : i32
    %c0_i32_1 = arith.constant 0 : i32
    return %arg1, %c0_i32, %c0_i32_0 : i32, i32, i32
  }
  func.func @transform_16(%arg0: i32, %arg1: i32) -> (i32, i32, i32) {
    %c0_i32 = arith.constant 0 : i32
    %c0_i32_0 = arith.constant 0 : i32
    %c0_i32_1 = arith.constant 0 : i32
    return %arg1, %c0_i32, %c0_i32_0 : i32, i32, i32
  }
  func.func @transform_17(%arg0: i32, %arg1: i32) -> (i32, i32, i32) {
    %c0_i32 = arith.constant 0 : i32
    %c0_i32_0 = arith.constant 0 : i32
    %c0_i32_1 = arith.constant 0 : i32
    return %arg1, %c0_i32, %c0_i32_0 : i32, i32, i32
  }
  func.func @transform_18(%arg0: i32, %arg1: i32) -> (i32, i32, i32) {
    %c0_i32 = arith.constant 0 : i32
    %c0_i32_0 = arith.constant 0 : i32
    %c0_i32_1 = arith.constant 0 : i32
    return %arg1, %c0_i32, %c0_i32_0 : i32, i32, i32
  }
  func.func @transform_19(%arg0: i32, %arg1: i32) -> (i32, i32, i32) {
    %c0_i32 = arith.constant 0 : i32
    %c0_i32_0 = arith.constant 0 : i32
    %c0_i32_1 = arith.constant 0 : i32
    return %arg1, %c0_i32, %c0_i32_0 : i32, i32, i32
  }
  func.func @transform_20(%arg0: i32, %arg1: i32) -> (i32, i32, i32) {
    %c0_i32 = arith.constant 0 : i32
    %c0_i32_0 = arith.constant 0 : i32
    %c0_i32_1 = arith.constant 0 : i32
    return %arg1, %c0_i32, %c0_i32_0 : i32, i32, i32
  }
  func.func @transform_21(%arg0: i32, %arg1: i32) -> (i32, i32, i32) {
    %c0_i32 = arith.constant 0 : i32
    %c0_i32_0 = arith.constant 0 : i32
    %c0_i32_1 = arith.constant 0 : i32
    return %arg1, %c0_i32, %c0_i32_0 : i32, i32, i32
  }
  func.func @transform_22(%arg0: i32, %arg1: i32) -> (i32, i32) {
    %c0_i32 = arith.constant 0 : i32
    %c0_i32_0 = arith.constant 0 : i32
    %c0_i32_1 = arith.constant 0 : i32
    return %c0_i32, %c0_i32_0 : i32, i32
  }
  func.func @transform_23(%arg0: i32, %arg1: i32) -> (i32, i32) {
    %c0_i32 = arith.constant 0 : i32
    %c0_i32_0 = arith.constant 0 : i32
    %c0_i32_1 = arith.constant 0 : i32
    return %c0_i32, %c0_i32_0 : i32, i32
  }
  func.func @transform_24(%arg0: i32, %arg1: i32) -> (i32, i32, i32) {
    %c0_i32 = arith.constant 0 : i32
    %c0_i32_0 = arith.constant 0 : i32
    %c0_i32_1 = arith.constant 0 : i32
    return %arg0, %c0_i32, %c0_i32_0 : i32, i32, i32
  }
}

</mosaic_0001>

<bundles_post_ra>
// kernel: _lambda_.1
= control target key start
LH: loop header
LB: loop body
LE: loop exit
PB: predicated region body
PF: predicated region fallthrough
CT: control target
= control target key end

     0   :  { %s3718_s26 = smov 0   ;;  %s3720_s27 = smov 0   ;;  %s4180_s0 = inlined_call_operand.vmem [shape: f32[2,4,256], index: 0, kind: input, shape index: {}]   ;;  %s4181_s1 = inlined_call_operand.vmem [shape: f32[1,256], index: 1, kind: input, shape index: {}]   ;;  %s4182_s2 = inlined_call_operand.vmem [shape: f32[1,256], index: 2, kind: input, shape index: {}]   ;;  %s4183_s3 = inlined_call_operand.vmem [shape: bf16[256,32], index: 3, kind: input, shape index: {}]   ;;  %s4184_s4 = inlined_call_operand.vmem [shape: f32[1,32], index: 4, kind: input, shape index: {}]   ;;  %s4185_s5 = inlined_call_operand.vmem [shape: f32[1,32], index: 5, kind: input, shape index: {}]   ;;  %s4186_s6 = inlined_call_operand.vmem [shape: f32[1,32], index: 6, kind: input, shape index: {}]   ;;  %s4187_s7 = inlined_call_operand.vmem [shape: f32[1,32], index: 7, kind: input, shape index: {}]   ;;  %s4188_s8 = inlined_call_operand.vmem [shape: f32[5,32], index: 8, kind: input, shape index: {}]   ;;  %s4189_s9 = inlined_call_operand.vmem [shape: f32[2,1,32], index: 9, kind: input, shape index: {}]   ;;  %s4190_s10 = inlined_call_operand.vmem [shape: f32[2,1,32], index: 10, kind: input, shape index: {}]   ;;  %s4191_s11 = inlined_call_operand.vmem [shape: bf16[2,4,32,8], index: 11, kind: input, shape index: {}]   ;;  %s4192_s12 = inlined_call_operand.vmem [shape: bf16[2,4,32,8], index: 12, kind: input, shape index: {}]   ;;  %s4193_s13 = inlined_call_operand.vmem [shape: bf16[2,4,32,8], index: 13, kind: input, shape index: {}]   ;;  %s4194_s14 = inlined_call_operand.vmem [shape: bf16[2,4,8,32], index: 14, kind: input, shape index: {}]   ;;  %s4195_s15 = inlined_call_operand.vmem [shape: f32[2,1,32], index: 15, kind: input, shape index: {}]   ;;  %s4196_s16 = inlined_call_operand.vmem [shape: f32[2,1,32], index: 16, kind: input, shape index: {}]   ;;  %s4197_s17 = inlined_call_operand.vmem [shape: f32[2,1,32], index: 17, kind: input, shape index: {}]   ;;  %s4198_s18 = inlined_call_operand.vmem [shape: bf16[2,32,64], index: 18, kind: input, shape index: {}]   ;;  %s4199_s19 = inlined_call_operand.vmem [shape: f32[2,1,64], index: 19, kind: input, shape index: {}]   ;;  %s4200_s20 = inlined_call_operand.vmem [shape: bf16[2,64,32], index: 20, kind: input, shape index: {}]   ;;  %s4201_s21 = inlined_call_operand.vmem [shape: f32[2,1,32], index: 21, kind: input, shape index: {}]   ;;  %s4202_s22 = inlined_call_operand.vmem [shape: f32[1,32], index: 22, kind: input, shape index: {}]   ;;  %s4203_s23 = inlined_call_operand.vmem [shape: f32[1,32], index: 23, kind: input, shape index: {}]   ;;  %s4204_s24 = inlined_call_operand.vmem [shape: f32[2,8,32], index: 24, kind: output, shape index: {}]  }
   0x1   :  { %4212 = sst [smem:[#allocation9_spill]] %s4180_s0  ;;  %s3722_s28 = smov 0  }
   0x2   :  { %4213 = sst [smem:[#allocation10_spill]] %s4181_s1 }
   0x3   :  { %4214 = sst [smem:[#allocation11_spill]] %s4182_s2 }
   0x4   :  { %4215 = sst [smem:[#allocation12_spill]] %s4183_s3 }
   0x5   :  { %4216 = sst [smem:[#allocation13_spill]] %s4184_s4 }
   0x6   :  { %4217 = sst [smem:[#allocation14_spill]] %s4185_s5  ;;  %s3716_s5 = smov 0  }
   0x7   :  { %4218 = sst [smem:[#allocation15_spill]] %s4186_s6  ;;  %s3724_s6 = smov 0  }
   0x8   :  { %4219 = sst [smem:[#allocation16_spill]] %s4187_s7 }
   0x9   :  { %4220 = sst [smem:[#allocation17_spill]] %s4188_s8 }
   0xa   :  { %4221 = sst [smem:[#allocation18_spill]] %s4190_s10 }
   0xb   :  { %4222 = sst [smem:[#allocation19_spill]] %s4191_s11 }
   0xc   :  { %4223 = sst [smem:[#allocation20_spill]] %s4192_s12 }
   0xd   :  { %4224 = sst [smem:[#allocation21_spill]] %s4193_s13 }
   0xe   :  { %4225 = sst [smem:[#allocation22_spill]] %s4194_s14 }
   0xf   :  { %4226 = sst [smem:[#allocation23_spill]] %s4202_s22 }
  0x10   :  { %4227 = sst [smem:[#allocation24_spill]] %s4203_s23 }
  0x11   :  { %4228 = sst [smem:[#allocation25_spill]] %s4204_s24 }
  0x12 LB: > { %4229 = sst [smem:[#allocation2_spill]] %s3569_s5  ;;  %s43_s2 = sadd.s32 1, %s3577_s27  ;;  %s3585_s6 = sphi %s3724_s6, %s34_s6   ;;  %s3581_s28 = sphi %s3722_s28, %s4266_s28   ;;  %s3577_s27 = sphi %s3720_s27, %s4265_s27   ;;  %s3573_s26 = sphi %s3718_s26, %s4264_s26   ;;  %s3569_s5 = sphi %s3716_s5, %s4263_s5  }
  0x13   : > { %4230 = sst [smem:[#allocation3_spill]] %s3577_s27  ;;  %s46_s29 = sadd.s32 1, %s3581_s28 }
  0x14   : > { %4231 = sst [smem:[#allocation4_spill]] %s3581_s28  ;;  %p44_p0 = scmp.ge.s32.totalorder %s43_s2, 2 }
  0x15   : > { %4232 = sst [smem:[#allocation5_spill]] %s3585_s6  ;;  %p3039_p1 = scmp.ge.s32.totalorder %s3585_s6, 1 }
  0x16   : > { %p790_p2 = scmp.lt.s32.totalorder %s3585_s6, 5  ;;  %s4268_s2 = smov (%p44_p0, %s43_s2), 0 }
  0x17   : > { %4233 = sst [smem:[#allocation6_spill]] %s4268_s2  ;;  %s4270_s29 = smov (!%p44_p0, %s46_s29), %s3581_s28 }
  0x18   : > { %p791_p3 = pnand %p3039_p1, %p790_p2  ;;  %p48_p4 = scmp.ge.s32.totalorder %s4270_s29, 2 }
  0x1a   : > { %s4272_s29 = smov (%p48_p4, %s4270_s29), 0  ;;  %794 = sbr.rel (%p791_p3) target bundleno = 3381 (0xd35), region = 116 }
  0x1b   : > { %4234 = sst [smem:[#allocation7_spill]] %s4272_s29 }
  0x1f   : > { %p906_p5 = scmp.lt.s32.totalorder %s3573_s26, 1  ;;  %p911_p6 = scmp.lt.s32.totalorder %s3569_s5, 1 }
  0x20   : > { %s4235_s25 = sld [smem:[#allocation9_spill]] }
  0x21   : > { %s4274_s26 = smov (!%p906_p5, %s3573_s26), 1  ;;  %s4237_s11 = sld [smem:[#allocation19_spill]] }
  0x22   : > { %s3750_s0 = scalar_select %p911_p6, %s3569_s5, 1 }
  0x23   : > { %s3143_s7 = sshll.u32 %s4274_s26, 3  ;;  %s4238_s12 = sld [smem:[#allocation20_spill]] }
  0x24   : > { %s3144_s6 = sshll.u32 %s3750_s0, 6  ;;  %s4239_s13 = sld [smem:[#allocation21_spill]] }
  0x25   : > { %s3147_s1 = sshll.u32 %s3750_s0, 4  ;;  %s4240_s14 = sld [smem:[#allocation22_spill]] }
  0x26   : > { %s910_s8 = scalar_lea.vmem %s4235_s25, %s3143_s7  ;;  %s961_s23 = scalar_lea.vmem %s4201_s21, %s3750_s0 }
  0x27   : > { %s3767_s5 = scalar_lea.vmem %s4237_s11, %s3144_s6  ;;  %s4242_s3 = sld [smem:[#allocation25_spill]] }
  0x29   : > { %s3772_s30 = scalar_lea.vmem %s4238_s12, %s3144_s6 }
  0x2a   : > { %s3777_s4 = scalar_lea.vmem %s4239_s13, %s3144_s6  ;;  %s3800_s13 = scalar_lea.vmem %s4198_s18, %s3147_s1 }
  0x2b   : > { %s3783_s2 = scalar_lea.vmem %s4240_s14, %s3147_s1  ;;  %s953_s14 = scalar_lea.vmem %s4199_s19, %s3750_s0 }
  0x2c   : > { %4241 = sst [smem:[#allocation8_spill]] %s3783_s2  ;;  %s3149_s2 = sshll.u32 %s3750_s0, 5 }
  0x2d   : > { %s3814_s24 = scalar_lea.vmem %s4200_s20, %s3149_s2  ;;  %s3819_s6 = scalar_lea.vmem %s4242_s3, %s3143_s7 }
  0x2e   : > { %s4243_s1 = sld [smem:[#allocation2_spill]] }
  0x34   : > { %p3055_p7 = scmp.ne.s32.totalorder %s4243_s1, 0 }
  0x35   : > { %s4244_s29 = sld [smem:[#allocation12_spill]] (!%p3055_p7) }
  0x36   : > { %970 = sbr.rel (%p3055_p7) target bundleno = 895 (0x37f), region = 120  ;;  %s4245_s10 = sld [smem:[#allocation10_spill]] (!%p3055_p7) }
  0x37   : > { %s4246_s26 = sld [smem:[#allocation11_spill]] (!%p3055_p7) }
  0x38   : > { %s4247_s2 = sld [smem:[#allocation13_spill]] (!%p3055_p7) }
  0x39   : > { %s4248_s3 = sld [smem:[#allocation16_spill]] (!%p3055_p7) }
  0x3a   : > { %s4249_s22 = sld [smem:[#allocation17_spill]] (!%p3055_p7) }
  0x3b   : > { %v971_v0 = vld [vmem:[%s910_s8] sm:$0xff]  ;;  %vm977_vm0 = vcmask 1043456   ;;  %v3473_v5 = vld [vmem:[%s4244_s29 + $0x78] sm:$0xff]   ;;  %v3587_v6 = vmov 839922192   ;;  %v989_v8 = vlaneseq  ;;  %v3475_v22 = vld [vmem:[%s4244_s29 + $0x70] sm:$0xff]  }
  0x3c   : > { %v975_v1 = vcombine.high %v971_v0, %v971_v0  ;;  %v978_v2 = vsel %vm977_vm0, %v971_v0, 0.0  ;;  %3150 = vmatprep.subr.bf16.mxu0 %v3473_v5  ;;  %v987_v7 = vunpack.c.l.s4 %v3587_v6  ;;  %v3474_v21 = vld [vmem:[%s4244_s29 + $0x38] sm:$0xff]   ;;  %v3476_v23 = vld [vmem:[%s4244_s29 + $0x30] sm:$0xff]   ;;  %v3477_v24 = vld [vmem:[%s4244_s29 + $0x68] sm:$0xff]   ;;  %vm1223_vm1 = vcmask 257024   ;;  %s4250_s12 = sld [smem:[#allocation14_spill]] }
  0x3d   : > { %v990_v10 = vshrl.u32 %v989_v8, 7  ;;  %3151 = vmatpush3.bf16.msra.mxu0 %v3474_v21  ;;  %v3478_v25 = vld [vmem:[%s4244_s29 + $0x28] sm:$0xff]   ;;  %v3479_v26 = vld [vmem:[%s4244_s29 + $0x60] sm:$0xff]   ;;  %v3481_v28 = vld [vmem:[%s4244_s29 + $0x58] sm:$0xff]   ;;  %vm1255_vm2 = vcmask 253952   ;;  %vm1260_vm3 = vcmask 256000  }
  0x3e   : > { %v979_v3 = vsel %vm977_vm0, %v975_v1, 0.0  ;;  %v988_v9 = vunpack.c.0.s8 %v987_v7  ;;  %3152 = vmatprep.subr.bf16.mxu0 %v3475_v22  ;;  %v3480_v27 = vld [vmem:[%s4244_s29 + $0x20] sm:$0xff]   ;;  %v3482_v29 = vld [vmem:[%s4244_s29 + $0x18] sm:$0xff]   ;;  %v3483_v30 = vld [vmem:[%s4244_s29 + $0x50] sm:$0xff]   ;;  %s4251_s25 = sld [smem:[#allocation15_spill]] }
  0x3f   : > { %v980_v4 = vadd.f32 %v979_v3, %v978_v2  ;;  %v3484_v31 = vld [vmem:[%s4244_s29 + $0x10] sm:$0xff]   ;;  %v3485_v32 = vld [vmem:[%s4244_s29 + $0x48] sm:$0xff]   ;;  %v3487_v34 = vld [vmem:[%s4244_s29 + $0x40] sm:$0xff]   ;;  %v1020_v39 = vsub.s32 0, %v990_v10  ;;  %v1024_v40 = vsub.s32 1, %v990_v10 }
  0x40   : > { %v991_v11 = vsub.s32 %v988_v9, %v990_v10  ;;  %v3486_v33 = vld [vmem:[%s4244_s29 + $0x8] sm:$0xff]   ;;  %v3488_v35 = vld [vmem:[%s4244_s29] sm:$0xff]   ;;  %v3588_v9 = vmov 0.0  }
  0x41   : > { %981 = vadd.xlane.f32.xlu0 %v980_v4  ;;  %3153 = vmatpush3.bf16.msra.mxu0 %v3476_v23  ;;  %v972_v41 = vld [vmem:[%s4245_s10] sm:$0x3]  ;;  %1261 = vst.msk [vmem:[%s3819_s6 + $0x5] sm:$0x7] %vm1260_vm3, %v3588_v9 }
  0x42   : > { %3154 = vmatprep.subr.bf16.mxu0 %v3477_v24  ;;  %v973_v42 = vld [vmem:[%s4246_s26] sm:$0x3]  ;;  %v1021_v43 = vrot.slane %v972_v41, %v1020_v39  ;;  %v1025_v44 = vrot.slane %v972_v41, %v1024_v40 }
  0x43   : > { %v1033_v45 = vrot.slane %v973_v42, %v1020_v39  ;;  %v1037_v46 = vrot.slane %v973_v42, %v1024_v40  ;;  %v3056_v59 = vld [vmem:[%s4247_s2] ss:$0 sm:$0xff] }
  0x44   : > { %v1026_v49 = vcombine.low %v1021_v43, %v1025_v44  ;;  %v1252_v6 = vld [vmem:[%s4248_s3] sm:$0x1] }
  0x45   : > { %3155 = vmatpush3.bf16.msra.mxu0 %v3478_v25  ;;  %v1038_v51 = vcombine.low %v1033_v45, %v1037_v46  ;;  %v1253_v7 = vld [vmem:[%s4249_s22] sm:$0x1] }
  0x46   : > { %3156 = vmatprep.subr.bf16.mxu0 %v3479_v26  ;;  %v1254_v8 = vadd.f32 %v1253_v7, %v1252_v6 }
  0x48   : > { %1256 = vst.msk [vmem:[%s3819_s6] sm:$0x1] %vm1255_vm2, %v1254_v8 }
  0x49   : > { %3157 = vmatpush3.bf16.msra.mxu0 %v3480_v27 }
  0x4a   : > { %3158 = vmatprep.subr.bf16.mxu0 %v3481_v28 }
  0x4d   : > { %3159 = vmatpush3.bf16.msra.mxu0 %v3482_v29 }
  0x4e   : > { %3160 = vmatprep.subr.bf16.mxu0 %v3483_v30 }
  0x51   : > { %3161 = vmatpush3.bf16.msra.mxu0 %v3484_v31 }
  0x52   : > { %3162 = vmatprep.subr.bf16.mxu0 %v3485_v32 }
  0x55   : > { %3163 = vmatpush3.bf16.msra.mxu0 %v3486_v33 }
  0x56   : > { %3164 = vmatprep.subr.bf16.mxu0 %v3487_v34 }
  0x59   : > { %3165 = vmatpush3.bf16.msra.mxu0 %v3488_v35 }
  0xca   : > { %v982_v12 = vpop.xlane.xlu0 %981 }
  0xcb   : > { %v984_v13 = vmul.f32 0.00390625, %v982_v12 }
  0xcd   : > { %v992_v14 = vrot.slane %v984_v13, %v991_v11 }
  0xcf   : > { %v994_v15 = vsub.f32 %v971_v0, %v992_v14  ;;  %v3073_v14 = vld [vmem:[%s4250_s12] ss:$0 sm:$0xff] }
  0xd1   : > { %v995_v16 = vmul.f32 %v994_v15, %v994_v15 }
  0xd3   : > { %v997_v17 = vcombine.high %v995_v16, %v995_v16  ;;  %v999_v18 = vsel %vm977_vm0, %v995_v16, 0.0  ;;  %v3074_v16 = vld [vmem:[%s4251_s25] ss:$0 sm:$0xff] }
  0xd5   : > { %v1000_v19 = vsel %vm977_vm0, %v997_v17, 0.0 }
  0xd6   : > { %v1001_v20 = vadd.f32 %v1000_v19, %v999_v18  ;;  %v1257_v18 = vld [vmem:[%s4249_s22 + $0x1] sm:$0xf] }
  0xd8   : > { %1002 = vadd.xlane.f32.xlu0 %v1001_v20 }
 0x161   : > { %v1003_v36 = vpop.xlane.xlu0 %1002 }
 0x162   : > { %v1004_v37 = vmul.f32 0.00390625, %v1003_v36 }
 0x164   : > { %v1005_v38 = vadd.f32 1e-05, %v1004_v37 }
 0x166   : > { %3489 = vrsqrt.f32 %v1005_v38 }
 0x173   : > { %v3490_v47 = vpop.eup %3489 }
 0x174   : > { %v1014_v48 = vrot.slane %v3490_v47, %v991_v11 }
 0x176   : > { %v1016_v50 = vmul.f32 %v1014_v48, %v994_v15 }
 0x178   : > { %v1028_v52 = vmul.f32 %v1026_v49, %v1016_v50 }
 0x17a   : > { %v1040_v53 = vadd.f32 %v1038_v51, %v1028_v52 }
 0x17c   : > { %v1042_v54 = vcombine.high %v1040_v53, %v1040_v53  ;;  %v1044_v56 = vpack.c.bf16 %v1040_v53, %v1040_v53 }
 0x17e   : > { %v1045_v55 = vpack.c.bf16 %v1042_v54, %v1042_v54 }
 0x180   : > { %1213 = vmatprep.mubr.bf16.mxu0 %v1045_v55 }
 0x181   : > { %1214 = vmatmul.mubr.bf16.vlgmr.msra.gmra.mxu0 %v1044_v56 }
 0x241   : > { %v3166_v57 = vpop.f32.mrf.mxu0 }
 0x243   : > { %v3167_v58 = vpop.f32.mrf.mxu0 }
 0x244   : > { %v3168_v60 = vadd.f32 %v3167_v58, %v3166_v57 }
 0x245   : > { %v3169_v61 = vpop.f32.mrf.mxu0 }
 0x246   : > { %v1216_v62 = vadd.f32 %v3168_v60, %v3056_v59 }
 0x247   : > { %v3170_v63 = vpop.f32.mrf.mxu0 }
 0x248   : > { %v1224_v0 = vsel %vm1223_vm1, %v1216_v62, 0.0 }
 0x249   : > { %1225 = vadd.xlane.f32.xlu1 %v1224_v0 }
 0x2d2   : > { %v1226_v1 = vpop.xlane.xlu1 %1225 }
 0x2d3   : > { %v1228_v2 = vmul.f32 0.03125, %v1226_v1 }
 0x2d5   : > { %v1229_v3 = vsub.f32 %v1216_v62, %v1228_v2 }
 0x2d7   : > { %v1230_v4 = vmul.f32 %v1229_v3, %v1229_v3 }
 0x2d9   : > { %v1231_v5 = vsel %vm1223_vm1, %v1230_v4, 0.0 }
 0x2da   : > { %1232 = vadd.xlane.f32.xlu1 %v1231_v5 }
 0x363   : > { %v1233_v10 = vpop.xlane.xlu1 %1232 }
 0x364   : > { %v1234_v11 = vmul.f32 0.03125, %v1233_v10 }
 0x366   : > { %v1235_v12 = vadd.f32 1e-05, %v1234_v11 }
 0x368   : > { %3491 = vrsqrt.f32 %v1235_v12 }
 0x375   : > { %v3492_v13 = vpop.eup %3491 }
 0x376   : > { %v1237_v15 = vmul.f32 %v3492_v13, %v1229_v3 }
 0x378   : > { %v1244_v17 = vmul.f32 %v3073_v14, %v1237_v15 }
 0x37a   : > { %v1251_v19 = vadd.f32 %v3074_v16, %v1244_v17 }
 0x37c   : > { %v1258_v20 = vadd.f32 %v1257_v18, %v1251_v19 }
 0x37e   : > { %1259 = vst.msk [vmem:[%s3819_s6 + $0x1] sm:$0xf] %vm1223_vm1, %v1258_v20 }
 0x37f PF: > { %vm1265_vm4 = vcmask 261120   ;;  %v3493_v28 = vld [vmem:[%s3767_s5 + $0x8] sm:$0xff]   ;;  %v3494_v29 = vld [vmem:[%s3767_s5 + $0x18] sm:$0xff]   ;;  %v3589_v30 = vmov 0.0   ;;  %v3495_v31 = vld [vmem:[%s3767_s5] sm:$0xff]   ;;  %vm3590_vm5 = vmmov 0   ;;  %s4252_s28 = scalar_lea.vmem %s4189_s9, %s3750_s0  ;;  %s4256_s26 = scalar_lea.vmem %s4195_s15, %s3750_s0 }
 0x380   : > { %3240 = vmatprep.subr.bf16.mxu0 %v3589_v30  ;;  %3248 = vmatprep.subr.bf16.mxu1 %v3589_v30  ;;  %v3496_v32 = vld [vmem:[%s3767_s5 + $0x10] sm:$0xff]   ;;  %v3075_v37 = vld [vmem:[%s4252_s28] ss:$0 sm:$0xff]  ;;  %s4253_s11 = sld [smem:[#allocation18_spill]]  ;;  %v3497_v42 = vld [vmem:[%s3767_s5 + $0x28] sm:$0xff]   ;;  %vm1978_vm6 = vcmask 64512   ;;  %s4257_s2 = scalar_lea.vmem %s4196_s16, %s3750_s0 }
 0x381   : > { %3241 = vmatpush3.bf16.msra.mxu0 %v3493_v28  ;;  %3249 = vmatpush3.bf16.msra.mxu1 %v3494_v29  ;;  %v3498_v43 = vld [vmem:[%s3767_s5 + $0x38] sm:$0xff]   ;;  %v3499_v45 = vld [vmem:[%s3767_s5 + $0x20] sm:$0xff]   ;;  %v3500_v46 = vld [vmem:[%s3767_s5 + $0x30] sm:$0xff]   ;;  %vm2225_vm7 = vcmask 1043456   ;;  %s4255_s5 = sld [smem:[#allocation8_spill]]  ;;  %vm2756_vm9 = vcmask 523264  }
 0x382   : > { %3242 = vmatprep.subr.bf16.mxu0 %v3589_v30  ;;  %3250 = vmatprep.subr.bf16.mxu1 %v3589_v30  ;;  %v3501_v47 = vld [vmem:[%s3772_s30 + $0x8] sm:$0xff]   ;;  %v3502_v48 = vld [vmem:[%s3772_s30 + $0x18] sm:$0xff]   ;;  %v3503_v49 = vld [vmem:[%s3772_s30] sm:$0xff]  }
 0x383   : > { %3244 = vmatprep.mubr.msk.bf16.mxu0 %vm3590_vm5, %v3589_v30  ;;  %3252 = vmatprep.mubr.msk.bf16.mxu1 %vm3590_vm5, %v3589_v30  ;;  %v3504_v50 = vld [vmem:[%s3772_s30 + $0x10] sm:$0xff]   ;;  %v3505_v51 = vld [vmem:[%s3772_s30 + $0x28] sm:$0xff]   ;;  %v3506_v52 = vld [vmem:[%s3772_s30 + $0x38] sm:$0xff]  }
 0x384   : > { %v3507_v53 = vld [vmem:[%s3772_s30 + $0x20] sm:$0xff]   ;;  %v3508_v54 = vld [vmem:[%s3772_s30 + $0x30] sm:$0xff]   ;;  %v3509_v55 = vld [vmem:[%s3777_s4 + $0x8] sm:$0xff]  }
 0x385   : > { %v3905_v21 = vld [vmem:[%s3819_s6] sm:$0xff]  ;;  %3243 = vmatpush3.bf16.msra.mxu0 %v3495_v31  ;;  %3251 = vmatpush3.bf16.msra.mxu1 %v3496_v32  ;;  %v3510_v56 = vld [vmem:[%s3777_s4 + $0x18] sm:$0xff]   ;;  %v3512_v58 = vld [vmem:[%s3777_s4 + $0x10] sm:$0xff]  }
 0x386   : > { %v1266_v22 = vsel %vm1265_vm4, %v3905_v21, 0.0  ;;  %3256 = vmatprep.subr.bf16.mxu0 %v3589_v30  ;;  %3264 = vmatprep.subr.bf16.mxu1 %v3589_v30  ;;  %s4254_s12 = scalar_lea.vmem %s4253_s11, %s3750_s0  ;;  %v3511_v57 = vld [vmem:[%s3777_s4] sm:$0xff]   ;;  %v3513_v59 = vld [vmem:[%s3777_s4 + $0x28] sm:$0xff]   ;;  %v3514_v60 = vld [vmem:[%s3777_s4 + $0x38] sm:$0xff]  }
 0x387   : > { %1267 = vadd.xlane.f32.xlu0 %v1266_v22  ;;  %v3076_v39 = vld [vmem:[%s4254_s12] ss:$0 sm:$0xff]  ;;  %v3516_v62 = vld [vmem:[%s3777_s4 + $0x30] sm:$0xff]  }
 0x388   : > { %v3515_v61 = vld [vmem:[%s3777_s4 + $0x20] sm:$0xff]  }
 0x410   : > { %v1268_v23 = vpop.xlane.xlu0 %1267 }
 0x411   : > { %v1270_v24 = vmul.f32 0.03125, %v1268_v23 }
 0x413   : > { %v1271_v25 = vsub.f32 %v3905_v21, %v1270_v24 }
 0x415   : > { %v1272_v26 = vmul.f32 %v1271_v25, %v1271_v25 }
 0x417   : > { %v1273_v27 = vsel %vm1265_vm4, %v1272_v26, 0.0 }
 0x418   : > { %1274 = vadd.xlane.f32.xlu0 %v1273_v27 }
 0x4a1   : > { %v1275_v33 = vpop.xlane.xlu0 %1274 }
 0x4a2   : > { %v1276_v34 = vmul.f32 0.03125, %v1275_v33 }
 0x4a4   : > { %v1277_v35 = vadd.f32 1e-05, %v1276_v34 }
 0x4a6   : > { %3523 = vrsqrt.f32 %v1277_v35 }
 0x4b3   : > { %v3524_v36 = vpop.eup %3523 }
 0x4b4   : > { %v1279_v38 = vmul.f32 %v3524_v36, %v1271_v25 }
 0x4b6   : > { %v1286_v40 = vmul.f32 %v3075_v37, %v1279_v38 }
 0x4b8   : > { %v1293_v41 = vadd.f32 %v3076_v39, %v1286_v40 }
 0x4ba   : > { %v3937_v44 = vpack.c.bf16 %v1293_v41, %v1293_v41 }
 0x4bc   : > { %3245 = vmatmul.mubr.msk.bf16.vlgmr.msra.gmra.mxu0 %vm1265_vm4, %v3937_v44  ;;  %3253 = vmatmul.mubr.msk.bf16.vlgmr.msra.gmra.mxu1 %vm1265_vm4, %v3937_v44 }
 0x4bd   : > { %3257 = vmatpush3.bf16.msra.mxu0 %v3497_v42  ;;  %3265 = vmatpush3.bf16.msra.mxu1 %v3498_v43 }
 0x4be   : > { %3258 = vmatprep.subr.bf16.mxu0 %v3589_v30  ;;  %3266 = vmatprep.subr.bf16.mxu1 %v3589_v30 }
 0x4bf   : > { %3260 = vmatprep.mubr.msk.bf16.mxu0 %vm3590_vm5, %v3589_v30  ;;  %3268 = vmatprep.mubr.msk.bf16.mxu1 %vm3590_vm5, %v3589_v30 }
 0x4c1   : > { %3259 = vmatpush3.bf16.msra.mxu0 %v3499_v45  ;;  %3267 = vmatpush3.bf16.msra.mxu1 %v3500_v46 }
 0x4c2   : > { %3272 = vmatprep.subr.bf16.mxu0 %v3589_v30  ;;  %3280 = vmatprep.subr.bf16.mxu1 %v3589_v30 }
 0x4c4   : > { %3261 = vmatmul.mubr.msk.bf16.vlgmr.msra.gmra.mxu0 %vm1265_vm4, %v3937_v44  ;;  %3269 = vmatmul.mubr.msk.bf16.vlgmr.msra.gmra.mxu1 %vm1265_vm4, %v3937_v44 }
 0x4c5   : > { %3273 = vmatpush3.bf16.msra.mxu0 %v3501_v47  ;;  %3281 = vmatpush3.bf16.msra.mxu1 %v3502_v48 }
 0x4c6   : > { %3274 = vmatprep.subr.bf16.mxu0 %v3589_v30  ;;  %3282 = vmatprep.subr.bf16.mxu1 %v3589_v30 }
 0x4c7   : > { %3276 = vmatprep.mubr.msk.bf16.mxu0 %vm3590_vm5, %v3589_v30  ;;  %3284 = vmatprep.mubr.msk.bf16.mxu1 %vm3590_vm5, %v3589_v30 }
 0x4c9   : > { %3275 = vmatpush3.bf16.msra.mxu0 %v3503_v49  ;;  %3283 = vmatpush3.bf16.msra.mxu1 %v3504_v50 }
 0x4ca   : > { %3288 = vmatprep.subr.bf16.mxu0 %v3589_v30  ;;  %3296 = vmatprep.subr.bf16.mxu1 %v3589_v30 }
 0x4cc   : > { %3277 = vmatmul.mubr.msk.bf16.vlgmr.msra.gmra.mxu0 %vm1265_vm4, %v3937_v44  ;;  %3285 = vmatmul.mubr.msk.bf16.vlgmr.msra.gmra.mxu1 %vm1265_vm4, %v3937_v44 }
 0x4cd   : > { %3289 = vmatpush3.bf16.msra.mxu0 %v3505_v51  ;;  %3297 = vmatpush3.bf16.msra.mxu1 %v3506_v52 }
 0x4ce   : > { %3290 = vmatprep.subr.bf16.mxu0 %v3589_v30  ;;  %3298 = vmatprep.subr.bf16.mxu1 %v3589_v30 }
 0x4cf   : > { %3292 = vmatprep.mubr.msk.bf16.mxu0 %vm3590_vm5, %v3589_v30  ;;  %3300 = vmatprep.mubr.msk.bf16.mxu1 %vm3590_vm5, %v3589_v30 }
 0x4d1   : > { %3291 = vmatpush3.bf16.msra.mxu0 %v3507_v53  ;;  %3299 = vmatpush3.bf16.msra.mxu1 %v3508_v54 }
 0x4d2   : > { %3304 = vmatprep.subr.bf16.mxu0 %v3589_v30  ;;  %3312 = vmatprep.subr.bf16.mxu1 %v3589_v30 }
 0x4d4   : > { %3293 = vmatmul.mubr.msk.bf16.vlgmr.msra.gmra.mxu0 %vm1265_vm4, %v3937_v44  ;;  %3301 = vmatmul.mubr.msk.bf16.vlgmr.msra.gmra.mxu1 %vm1265_vm4, %v3937_v44 }
 0x4d5   : > { %3305 = vmatpush3.bf16.msra.mxu0 %v3509_v55  ;;  %3313 = vmatpush3.bf16.msra.mxu1 %v3510_v56 }
 0x4d6   : > { %3306 = vmatprep.subr.bf16.mxu0 %v3589_v30  ;;  %3314 = vmatprep.subr.bf16.mxu1 %v3589_v30 }
 0x4d7   : > { %3308 = vmatprep.mubr.msk.bf16.mxu0 %vm3590_vm5, %v3589_v30  ;;  %3316 = vmatprep.mubr.msk.bf16.mxu1 %vm3590_vm5, %v3589_v30 }
 0x4d9   : > { %3307 = vmatpush3.bf16.msra.mxu0 %v3511_v57  ;;  %3315 = vmatpush3.bf16.msra.mxu1 %v3512_v58 }
 0x4da   : > { %3320 = vmatprep.subr.bf16.mxu0 %v3589_v30  ;;  %3328 = vmatprep.subr.bf16.mxu1 %v3589_v30 }
 0x4dc   : > { %3309 = vmatmul.mubr.msk.bf16.vlgmr.msra.gmra.mxu0 %vm1265_vm4, %v3937_v44  ;;  %3317 = vmatmul.mubr.msk.bf16.vlgmr.msra.gmra.mxu1 %vm1265_vm4, %v3937_v44 }
 0x4dd   : > { %3321 = vmatpush3.bf16.msra.mxu0 %v3513_v59  ;;  %3329 = vmatpush3.bf16.msra.mxu1 %v3514_v60 }
 0x4de   : > { %3322 = vmatprep.subr.bf16.mxu0 %v3589_v30  ;;  %3330 = vmatprep.subr.bf16.mxu1 %v3589_v30 }
 0x4df   : > { %3324 = vmatprep.mubr.msk.bf16.mxu0 %vm3590_vm5, %v3589_v30  ;;  %3332 = vmatprep.mubr.msk.bf16.mxu1 %vm3590_vm5, %v3589_v30 }
 0x4e1   : > { %3323 = vmatpush3.bf16.msra.mxu0 %v3515_v61  ;;  %3331 = vmatpush3.bf16.msra.mxu1 %v3516_v62 }
 0x4e2   : > { %3336 = vmatprep.subr.bf16.mxu0 %v3589_v30  ;;  %3342 = vmatprep.subr.bf16.mxu1 %v3589_v30 }
 0x4e4   : > { %3325 = vmatmul.mubr.msk.bf16.vlgmr.msra.gmra.mxu0 %vm1265_vm4, %v3937_v44  ;;  %3333 = vmatmul.mubr.msk.bf16.vlgmr.msra.gmra.mxu1 %vm1265_vm4, %v3937_v44 }
 0x4e5   : > { %3338 = vmatprep.mubr.msk.bf16.mxu0 %vm3590_vm5, %v3589_v30  ;;  %3344 = vmatprep.mubr.msk.bf16.mxu1 %vm3590_vm5, %v3589_v30 }
 0x57c   : > { %v1360_v63 = vpop.f32.mrf.mxu0  ;;  %v1412_v0 = vpop.f32.mrf.mxu1 }
 0x57d   : > { %v1970_v31 = vpack.c.bf16 %v1360_v63, %v1360_v63  ;;  %v1971_v32 = vpack.c.bf16 %v1412_v0, %v1412_v0 }
 0x57e   : > { %v3246_v1 = vpop.f32.mrf.mxu0  ;;  %v3254_v2 = vpop.f32.mrf.mxu1 }
 0x57f   : > { %v2163_v1 = vlaneseq }
 0x580   : > { %v1363_v3 = vpop.f32.mrf.mxu0  ;;  %v1415_v4 = vpop.f32.mrf.mxu1 }
 0x581   : > { %v2164_v2 = vand.u32 127, %v2163_v1 }
 0x582   : > { %v3247_v5 = vpop.f32.mrf.mxu0  ;;  %v3255_v6 = vpop.f32.mrf.mxu1 }
 0x583   : > { %vm2165_vm8 = vcmp.lt.s32.totalorder %v2164_v2, 5  ;;  %v2411_v2 = vld [vmem:[%s4255_s5] sm:$0xf] }
 0x584   : > { %v1464_v7 = vpop.f32.mrf.mxu0  ;;  %v1516_v8 = vpop.f32.mrf.mxu1 }
 0x585   : > { %v1972_v45 = vpack.c.bf16 %v1464_v7, %v1464_v7  ;;  %v1973_v46 = vpack.c.bf16 %v1516_v8, %v1516_v8 }
 0x586   : > { %v3262_v9 = vpop.f32.mrf.mxu0  ;;  %v3270_v10 = vpop.f32.mrf.mxu1 }
 0x588   : > { %v1467_v11 = vpop.f32.mrf.mxu0  ;;  %v1519_v12 = vpop.f32.mrf.mxu1 }
 0x58a   : > { %v3263_v13 = vpop.f32.mrf.mxu0  ;;  %v3271_v14 = vpop.f32.mrf.mxu1 }
 0x58c   : > { %v1584_v15 = vpop.f32.mrf.mxu0  ;;  %v1636_v16 = vpop.f32.mrf.mxu1 }
 0x58d   : > { %v1974_v17 = vpack.c.bf16 %v1584_v15, %v1584_v15  ;;  %v1975_v18 = vpack.c.bf16 %v1636_v16, %v1636_v16 }
 0x58e   : > { %v3278_v19 = vpop.f32.mrf.mxu0  ;;  %v3286_v20 = vpop.f32.mrf.mxu1 }
 0x58f   : > { %v1983_v22 = vsel %vm1978_vm6, %v1974_v17, 0  ;;  %v2029_v23 = vsel %vm1978_vm6, %v1975_v18, 0 }
 0x590   : > { %v1587_v24 = vpop.f32.mrf.mxu0  ;;  %v1639_v25 = vpop.f32.mrf.mxu1  ;;  %3337 = vmatpush3.bf16.xpose.msra.mxu0 %v1983_v22  ;;  %3343 = vmatpush3.bf16.xpose.msra.mxu1 %v2029_v23 }
 0x591   : > { %3348 = vmatprep.subr.bf16.mxu0 %v3589_v30  ;;  %3354 = vmatprep.subr.bf16.mxu1 %v3589_v30 }
 0x592   : > { %v3279_v26 = vpop.f32.mrf.mxu0  ;;  %v3287_v27 = vpop.f32.mrf.mxu1 }
 0x594   : > { %v1688_v28 = vpop.f32.mrf.mxu0  ;;  %v1740_v29 = vpop.f32.mrf.mxu1 }
 0x595   : > { %v1976_v33 = vpack.c.bf16 %v1688_v28, %v1688_v28  ;;  %v1977_v34 = vpack.c.bf16 %v1740_v29, %v1740_v29 }
 0x596   : > { %v3294_v35 = vpop.f32.mrf.mxu0  ;;  %v3302_v36 = vpop.f32.mrf.mxu1 }
 0x597   : > { %v2075_v37 = vsel %vm1978_vm6, %v1976_v33, 0  ;;  %v2121_v38 = vsel %vm1978_vm6, %v1977_v34, 0  ;;  %3339 = vmatmul.mubr.msk.bf16.vlgmr.msra.gmra.mxu0 %vm1978_vm6, %v1970_v31  ;;  %3345 = vmatmul.mubr.msk.bf16.vlgmr.msra.gmra.mxu1 %vm1978_vm6, %v1971_v32 }
 0x598   : > { %v1691_v39 = vpop.f32.mrf.mxu0  ;;  %v1743_v40 = vpop.f32.mrf.mxu1  ;;  %3349 = vmatpush3.bf16.xpose.msra.mxu0 %v2075_v37  ;;  %3355 = vmatpush3.bf16.xpose.msra.mxu1 %v2121_v38 }
 0x599   : > { %3350 = vmatprep.mubr.msk.bf16.mxu0 %vm3590_vm5, %v3589_v30  ;;  %3356 = vmatprep.mubr.msk.bf16.mxu1 %vm3590_vm5, %v3589_v30 }
 0x59a   : > { %v3295_v41 = vpop.f32.mrf.mxu0  ;;  %v3303_v42 = vpop.f32.mrf.mxu1  ;;  %3360 = vmatprep.subr.bf16.mxu0 %v3589_v30  ;;  %3366 = vmatprep.subr.bf16.mxu1 %v3589_v30 }
 0x59c   : > { %v1808_v43 = vpop.f32.mrf.mxu0  ;;  %v1860_v44 = vpop.f32.mrf.mxu1 }
 0x59d   : > { %v2218_v47 = vpack.c.bf16 %v1808_v43, %v1808_v43  ;;  %v2219_v48 = vpack.c.bf16 %v1860_v44, %v1860_v44 }
 0x59e   : > { %v3310_v49 = vpop.f32.mrf.mxu0  ;;  %v3318_v50 = vpop.f32.mrf.mxu1 }
 0x59f   : > { %v2227_v51 = vsel %vm2225_vm7, %v2218_v47, 0  ;;  %v2273_v52 = vsel %vm2225_vm7, %v2219_v48, 0  ;;  %3351 = vmatmul.mubr.msk.bf16.vlgmr.msra.gmra.mxu0 %vm1978_vm6, %v1972_v45  ;;  %3357 = vmatmul.mubr.msk.bf16.vlgmr.msra.gmra.mxu1 %vm1978_vm6, %v1973_v46 }
 0x5a0   : > { %v1811_v53 = vpop.f32.mrf.mxu0  ;;  %v1863_v54 = vpop.f32.mrf.mxu1  ;;  %3361 = vmatpush3.bf16.msra.mxu0 %v2227_v51  ;;  %3367 = vmatpush3.bf16.msra.mxu1 %v2273_v52 }
 0x5a1   : > { %3362 = vmatprep.mubr.msk.bf16.mxu0 %vm3590_vm5, %v3589_v30  ;;  %3372 = vmatprep.subr.bf16.mxu0 %v3589_v30 }
 0x5a2   : > { %v3311_v55 = vpop.f32.mrf.mxu0  ;;  %v3319_v56 = vpop.f32.mrf.mxu1  ;;  %3368 = vmatprep.mubr.msk.bf16.mxu1 %vm3590_vm5, %v3589_v30  ;;  %3378 = vmatprep.subr.bf16.mxu1 %v3589_v30 }
 0x5a4   : > { %v4049_v57 = vpop.f32.mrf.mxu0  ;;  %v4051_v58 = vpop.f32.mrf.mxu1 }
 0x5a5   : > { %v2220_v54 = vpack.c.bf16 %v4049_v57, %v4049_v57 }
 0x5a6   : > { %v3326_v59 = vpop.f32.mrf.mxu0  ;;  %v3334_v60 = vpop.f32.mrf.mxu1 }
 0x5a7   : > { %v2319_v60 = vsel %vm2225_vm7, %v2220_v54, 0 }
 0x5a8   : > { %v1915_v61 = vpop.f32.mrf.mxu0  ;;  %v1967_v62 = vpop.f32.mrf.mxu1 }
 0x5a9   : > { %v2221_v61 = vpack.c.bf16 %v4051_v58, %v4051_v58 }
 0x5aa   : > { %v3327_v63 = vpop.f32.mrf.mxu0  ;;  %v3335_v0 = vpop.f32.mrf.mxu1 }
 0x5ab   : > { %v2365_v1 = vsel %vm2225_vm7, %v2221_v61, 0 }
 0x657   : > { %v2019_v3 = vpop.f32.mrf.mxu0  ;;  %v2065_v4 = vpop.f32.mrf.mxu1 }
 0x658   : > { %v2166_v5 = vsel %vm2165_vm8, %v2019_v3, -1e+30  ;;  %v2167_v9 = vsel %vm2165_vm8, %v2065_v4, -1e+30 }
 0x659   : > { %v3340_v6 = vpop.f32.mrf.mxu0  ;;  %v3346_v7 = vpop.f32.mrf.mxu1  ;;  %v2170_v8 = vsel %vm1978_vm6, %v2166_v5, -inf  ;;  %v2173_v14 = vsel %vm1978_vm6, %v2167_v9, -inf }
 0x65a   : > { %2171 = vmax.xlane.f32.xlu1 %v2170_v8  ;;  %v2412_v7 = vld [vmem:[%s4255_s5 + $0x4] sm:$0xf] }
 0x65b   : > { %v2022_v10 = vpop.f32.mrf.mxu0  ;;  %v2068_v11 = vpop.f32.mrf.mxu1  ;;  %v2465_v8 = vsel %vm2225_vm7, %v2412_v7, 0 }
 0x65d   : > { %v3341_v12 = vpop.f32.mrf.mxu0  ;;  %v3347_v13 = vpop.f32.mrf.mxu1 }
 0x65e   : > { %2174 = vmax.xlane.f32.xlu1 %v2173_v14  ;;  %v2414_v14 = vld [vmem:[%s4255_s5 + $0xc] sm:$0xf] }
 0x65f   : > { %v2111_v15 = vpop.f32.mrf.mxu0  ;;  %v2157_v16 = vpop.f32.mrf.mxu1 }
 0x660   : > { %v2168_v17 = vsel %vm2165_vm8, %v2111_v15, -1e+30  ;;  %v2169_v18 = vsel %vm2165_vm8, %v2157_v16, -1e+30 }
 0x661   : > { %v3352_v19 = vpop.f32.mrf.mxu0  ;;  %v3358_v20 = vpop.f32.mrf.mxu1  ;;  %v2179_v22 = vsel %vm1978_vm6, %v2169_v18, -inf  ;;  %v2176_v23 = vsel %vm1978_vm6, %v2168_v17, -inf }
 0x662   : > { %2180 = vmax.xlane.f32.xlu1 %v2179_v22  ;;  %2177 = vmax.xlane.f32.xlu0 %v2176_v23 }
 0x663   : > { %v2114_v24 = vpop.f32.mrf.mxu0  ;;  %v2160_v25 = vpop.f32.mrf.mxu1 }
 0x665   : > { %v3353_v26 = vpop.f32.mrf.mxu0  ;;  %v3359_v27 = vpop.f32.mrf.mxu1 }
 0x6e3   : > { %v2172_v28 = vpop.xlane.xlu1 %2171 }
 0x6e4   : > { %v2182_v29 = vsub.f32 %v2166_v5, %v2172_v28  ;;  %v2419_v5 = vsel %vm2225_vm7, %v2411_v2, 0 }
 0x6e6   : > { %v2186_v31 = vmul.f32 1.442695, %v2182_v29 }
 0x6e7   : > { %v2175_v32 = vpop.xlane.xlu1 %2174 }
 0x6e8   : > { %3525 = vpow2.f32 %v2186_v31  ;;  %v2183_v33 = vsub.f32 %v2167_v9, %v2175_v32  ;;  %v2413_v9 = vld [vmem:[%s4255_s5 + $0x8] sm:$0xf] }
 0x6e9   : > { %v2511_v12 = vsel %vm2225_vm7, %v2413_v9, 0 }
 0x6ea   : > { %v2188_v34 = vmul.f32 1.442695, %v2183_v33 }
 0x6eb   : > { %v2181_v35 = vpop.xlane.xlu1 %2180  ;;  %v2178_v36 = vpop.xlane.xlu0 %2177 }
 0x6ec   : > { %3527 = vpow2.f32 %v2188_v34  ;;  %v2185_v37 = vsub.f32 %v2169_v18, %v2181_v35  ;;  %v2184_v38 = vsub.f32 %v2168_v17, %v2178_v36  ;;  %v2557_v18 = vsel %vm2225_vm7, %v2414_v14, 0  ;;  %v3519_v14 = vld [vmem:[%s3814_s24 + $0x18] sm:$0xff]  }
 0x6ee   : > { %v2192_v39 = vmul.f32 1.442695, %v2185_v37  ;;  %v2190_v40 = vmul.f32 1.442695, %v2184_v38 }
 0x6f0   : > { %3529 = vpow2.f32 %v2192_v39 }
 0x6f1   : > { %3531 = vpow2.f32 %v2190_v40 }
 0x6f5   : > { %v3526_v41 = vpop.eup %3525 }
 0x6f6   : > { %v2194_v42 = vsel %vm1978_vm6, %v3526_v41, 0.0 }
 0x6f7   : > { %2195 = vadd.xlane.f32.xlu0 %v2194_v42 }
 0x6f9   : > { %v3528_v43 = vpop.eup %3527 }
 0x6fa   : > { %v2197_v44 = vsel %vm1978_vm6, %v3528_v43, 0.0 }
 0x6fb   : > { %2198 = vadd.xlane.f32.xlu1 %v2197_v44 }
 0x6fd   : > { %v3530_v45 = vpop.eup %3529 }
 0x6fe   : > { %v3532_v46 = vpop.eup %3531  ;;  %v2203_v47 = vsel %vm1978_vm6, %v3530_v45, 0.0 }
 0x6ff   : > { %2204 = vadd.xlane.f32.xlu1 %v2203_v47  ;;  %v2200_v48 = vsel %vm1978_vm6, %v3532_v46, 0.0 }
 0x700   : > { %2201 = vadd.xlane.f32.xlu0 %v2200_v48 }
 0x780   : > { %v2196_v49 = vpop.xlane.xlu0 %2195 }
 0x781   : > { %3533 = vrcp.f32 %v2196_v49 }
 0x784   : > { %v2199_v50 = vpop.xlane.xlu1 %2198 }
 0x785   : > { %3535 = vrcp.f32 %v2199_v50 }
 0x788   : > { %v2205_v51 = vpop.xlane.xlu1 %2204 }
 0x789   : > { %3537 = vrcp.f32 %v2205_v51  ;;  %v2202_v52 = vpop.xlane.xlu0 %2201 }
 0x78a   : > { %3539 = vrcp.f32 %v2202_v52 }
 0x78e   : > { %v3534_v53 = vpop.eup %3533 }
 0x78f   : > { %v2210_v55 = vmul.f32 %v3534_v53, %v3526_v41 }
 0x791   : > { %v2214_v56 = vpack.c.bf16 %v2210_v55, %v2210_v55 }
 0x792   : > { %v3536_v59 = vpop.eup %3535 }
 0x793   : > { %3363 = vmatmul.mubr.msk.bf16.vlgmr.msra.gmra.mxu0 %vm1978_vm6, %v2214_v56  ;;  %v2211_v62 = vmul.f32 %v3536_v59, %v3528_v43  ;;  %v3125_v56 = vld [vmem:[%s4256_s26] ss:$0 sm:$0xff] }
 0x794   : > { %3373 = vmatpush3.bf16.msra.mxu0 %v2319_v60  ;;  %3374 = vmatprep.mubr.msk.bf16.mxu0 %vm3590_vm5, %v3589_v30 }
 0x795   : > { %v2215_v63 = vpack.c.bf16 %v2211_v62, %v2211_v62  ;;  %3384 = vmatprep.subr.bf16.mxu0 %v3589_v30 }
 0x796   : > { %v3538_v57 = vpop.eup %3537 }
 0x797   : > { %v3540_v0 = vpop.eup %3539  ;;  %3369 = vmatmul.mubr.msk.bf16.vlgmr.msra.gmra.mxu1 %vm1978_vm6, %v2215_v63  ;;  %v2213_v3 = vmul.f32 %v3538_v57, %v3530_v45 }
 0x798   : > { %3379 = vmatpush3.bf16.msra.mxu1 %v2365_v1  ;;  %v2212_v58 = vmul.f32 %v3540_v0, %v3532_v46  ;;  %3380 = vmatprep.mubr.msk.bf16.mxu1 %vm3590_vm5, %v3589_v30 }
 0x799   : > { %3390 = vmatprep.subr.bf16.mxu1 %v3589_v30  ;;  %v2217_v6 = vpack.c.bf16 %v2213_v3, %v2213_v3  ;;  %v3517_v3 = vld [vmem:[%s3800_s13 + $0x8] sm:$0xff]  }
 0x79a   : > { %v2216_v4 = vpack.c.bf16 %v2212_v58, %v2212_v58 }
 0x79c   : > { %3375 = vmatmul.mubr.msk.bf16.vlgmr.msra.gmra.mxu0 %vm1978_vm6, %v2216_v4  ;;  %v3518_v4 = vld [vmem:[%s3800_s13] sm:$0xff]   ;;  %s4258_s13 = scalar_lea.vmem %s4197_s17, %s3750_s0 }
 0x79d   : > { %3385 = vmatpush3.bf16.msra.mxu0 %v2419_v5  ;;  %3386 = vmatprep.mubr.msk.bf16.mxu0 %vm3590_vm5, %v3589_v30 }
 0x79e   : > { %3396 = vmatprep.subr.bf16.mxu0 %v3589_v30 }
 0x79f   : > { %3381 = vmatmul.mubr.msk.bf16.vlgmr.msra.gmra.mxu1 %vm1978_vm6, %v2217_v6 }
 0x7a0   : > { %3392 = vmatprep.mubr.msk.bf16.mxu1 %vm3590_vm5, %v3589_v30  ;;  %3391 = vmatpush3.bf16.msra.mxu1 %v2465_v8  ;;  %v3126_v8 = vld [vmem:[%s4257_s2] ss:$0 sm:$0xff] }
 0x7a1   : > { %3402 = vmatprep.subr.bf16.mxu1 %v3589_v30 }
 0x853   : > { %v2263_v10 = vpop.f32.mrf.mxu0 }
 0x854   : > { %v2407_v11 = vpack.c.bf16 %v2263_v10, %v2263_v10  ;;  %v3127_v10 = vld [vmem:[%s4258_s13] ss:$0 sm:$0xff] }
 0x855   : > { %v3364_v13 = vpop.f32.mrf.mxu0 }
 0x856   : > { %3387 = vmatmul.mubr.msk.bf16.vlgmr.msra.gmra.mxu0 %vm1978_vm6, %v2407_v11 }
 0x857   : > { %v2266_v15 = vpop.f32.mrf.mxu0  ;;  %v2309_v16 = vpop.f32.mrf.mxu1  ;;  %3397 = vmatpush3.bf16.msra.mxu0 %v2511_v12  ;;  %3398 = vmatprep.mubr.msk.bf16.mxu0 %vm3590_vm5, %v3589_v30 }
 0x858   : > { %v2408_v17 = vpack.c.bf16 %v2309_v16, %v2309_v16  ;;  %3408 = vmatprep.subr.bf16.mxu0 %v3589_v30  ;;  %v3520_v15 = vld [vmem:[%s3814_s24 + $0x10] sm:$0xff]   ;;  %v3521_v16 = vld [vmem:[%s3814_s24 + $0x8] sm:$0xff]  }
 0x859   : > { %v3365_v19 = vpop.f32.mrf.mxu0  ;;  %v3370_v20 = vpop.f32.mrf.mxu1 }
 0x85a   : > { %3393 = vmatmul.mubr.msk.bf16.vlgmr.msra.gmra.mxu1 %vm1978_vm6, %v2408_v17  ;;  %v3522_v17 = vld [vmem:[%s3814_s24] sm:$0xff]  }
 0x85b   : > { %v2312_v22 = vpop.f32.mrf.mxu1  ;;  %3403 = vmatpush3.bf16.msra.mxu1 %v2557_v18  ;;  %3404 = vmatprep.mubr.msk.bf16.mxu1 %vm3590_vm5, %v3589_v30  ;;  %v3128_v18 = vld [vmem:[%s953_s14] ss:$0 sm:$0xff]  ;;  %s4259_s14 = sld [smem:[#allocation2_spill]] }
 0x85c   : > { %v2355_v23 = vpop.f32.mrf.mxu0  ;;  %3416 = vmatprep.subr.bf16.mxu1 %v3589_v30 }
 0x85d   : > { %v2409_v24 = vpack.c.bf16 %v2355_v23, %v2355_v23  ;;  %v3371_v25 = vpop.f32.mrf.mxu1 }
 0x85e   : > { %v3376_v26 = vpop.f32.mrf.mxu0 }
 0x85f   : > { %3399 = vmatmul.mubr.msk.bf16.vlgmr.msra.gmra.mxu0 %vm1978_vm6, %v2409_v24  ;;  %v2401_v27 = vpop.f32.mrf.mxu1 }
 0x860   : > { %v2358_v28 = vpop.f32.mrf.mxu0  ;;  %v2410_v29 = vpack.c.bf16 %v2401_v27, %v2401_v27  ;;  %3412 = vmatprep.mubr.msk.bf16.mxu0 %vm3590_vm5, %v3589_v30  ;;  %3409 = vmatpush3.bf16.msra.mxu0 %v3517_v3 }
 0x861   : > { %v3382_v31 = vpop.f32.mrf.mxu1  ;;  %3410 = vmatprep.subr.bf16.mxu0 %v3589_v30  ;;  %p3138_p8 = scmp.ne.s32.totalorder %s4259_s14, 1 }
 0x862   : > { %v3377_v32 = vpop.f32.mrf.mxu0  ;;  %3405 = vmatmul.mubr.msk.bf16.vlgmr.msra.gmra.mxu1 %vm1978_vm6, %v2410_v29  ;;  %v3132_v31 = vld [vmem:[%s961_s23] ss:$0 sm:$0xff]  ;;  %s4260_s10 = sld [smem:[#allocation23_spill]] (!%p3138_p8) }
 0x863   : > { %v2404_v33 = vpop.f32.mrf.mxu1  ;;  %3424 = vmatprep.mubr.msk.bf16.mxu1 %vm3590_vm5, %v3589_v30  ;;  %3417 = vmatpush3.bf16.msra.mxu1 %v3519_v14  ;;  %s4261_s5 = sld [smem:[#allocation24_spill]] (!%p3138_p8) }
 0x864   : > { %3411 = vmatpush3.bf16.msra.mxu0 %v3518_v4  ;;  %3418 = vmatprep.subr.bf16.mxu1 %v3589_v30 }
 0x865   : > { %v3383_v34 = vpop.f32.mrf.mxu1 }
 0x867   : > { %3419 = vmatpush3.bf16.msra.mxu1 %v3520_v15 }
 0x868   : > { %3420 = vmatprep.subr.bf16.mxu1 %v3589_v30 }
 0x86b   : > { %3421 = vmatpush3.bf16.msra.mxu1 %v3521_v16 }
 0x86c   : > { %3422 = vmatprep.subr.bf16.mxu1 %v3589_v30 }
 0x86f   : > { %3423 = vmatpush3.bf16.msra.mxu1 %v3522_v17 }
 0x916   : > { %v2455_v35 = vpop.f32.mrf.mxu0 }
 0x917   : > { %v2599_v43 = vsel %vm1265_vm4, %v2455_v35, 0.0 }
 0x918   : > { %v3388_v36 = vpop.f32.mrf.mxu0 }
 0x91a   : > { %v2458_v37 = vpop.f32.mrf.mxu0  ;;  %v2501_v38 = vpop.f32.mrf.mxu1 }
 0x91b   : > { %v2600_v41 = vsel %vm1265_vm4, %v2501_v38, 0.0 }
 0x91c   : > { %v3389_v39 = vpop.f32.mrf.mxu0  ;;  %v3394_v40 = vpop.f32.mrf.mxu1  ;;  %v2601_v45 = vadd.f32 %v2600_v41, %v2599_v43 }
 0x91e   : > { %v2504_v42 = vpop.f32.mrf.mxu1 }
 0x91f   : > { %v2547_v44 = vpop.f32.mrf.mxu0 }
 0x920   : > { %v2602_v46 = vsel %vm1265_vm4, %v2547_v44, 0.0  ;;  %v3395_v47 = vpop.f32.mrf.mxu1 }
 0x921   : > { %v3400_v48 = vpop.f32.mrf.mxu0  ;;  %v2603_v49 = vadd.f32 %v2602_v46, %v2601_v45 }
 0x922   : > { %v2593_v50 = vpop.f32.mrf.mxu1 }
 0x923   : > { %v2550_v51 = vpop.f32.mrf.mxu0  ;;  %v2604_v52 = vsel %vm1265_vm4, %v2593_v50, 0.0 }
 0x924   : > { %v2605_v53 = vadd.f32 %v2604_v52, %v2603_v49  ;;  %v3406_v54 = vpop.f32.mrf.mxu1 }
 0x925   : > { %v3401_v55 = vpop.f32.mrf.mxu0 }
 0x926   : > { %v2606_v59 = vadd.f32 %v2605_v53, %v3905_v21  ;;  %v2596_v60 = vpop.f32.mrf.mxu1 }
 0x928   : > { %v3407_v61 = vpop.f32.mrf.mxu1  ;;  %v2614_v62 = vadd.f32 %v3125_v56, %v2606_v59 }
 0x92a   : > { %v2617_v63 = vsel %vm1265_vm4, %v2614_v62, 0.0 }
 0x92b   : > { %2618 = vadd.xlane.f32.xlu0 %v2617_v63 }
 0x9b4   : > { %v2619_v57 = vpop.xlane.xlu0 %2618 }
 0x9b5   : > { %v2620_v0 = vmul.f32 0.03125, %v2619_v57 }
 0x9b7   : > { %v2621_v1 = vsub.f32 %v2614_v62, %v2620_v0 }
 0x9b9   : > { %v2622_v2 = vmul.f32 %v2621_v1, %v2621_v1 }
 0x9bb   : > { %v2623_v58 = vsel %vm1265_vm4, %v2622_v2, 0.0 }
 0x9bc   : > { %2624 = vadd.xlane.f32.xlu1 %v2623_v58 }
 0xa45   : > { %v2625_v21 = vpop.xlane.xlu1 %2624 }
 0xa46   : > { %v2626_v5 = vmul.f32 0.03125, %v2625_v21 }
 0xa48   : > { %v2627_v6 = vadd.f32 1e-05, %v2626_v5 }
 0xa4a   : > { %3541 = vrsqrt.f32 %v2627_v6 }
 0xa57   : > { %v3542_v7 = vpop.eup %3541 }
 0xa58   : > { %v2629_v9 = vmul.f32 %v3542_v7, %v2621_v1 }
 0xa5a   : > { %v2636_v11 = vmul.f32 %v3126_v8, %v2629_v9 }
 0xa5c   : > { %v2643_v12 = vadd.f32 %v3127_v10, %v2636_v11 }
 0xa5e   : > { %v2644_v13 = vpack.c.bf16 %v2643_v12, %v2643_v12 }
 0xa60   : > { %3413 = vmatmul.mubr.msk.bf16.vlgmr.msra.gmra.mxu0 %vm1265_vm4, %v2644_v13 }
 0xb20   : > { %v2705_v19 = vpop.f32.mrf.mxu0 }
 0xb21   : > { %v2706_v20 = vadd.f32 %v3128_v18, %v2705_v19 }
 0xb22   : > { %v3414_v22 = vpop.f32.mrf.mxu0 }
 0xb23   : > { %v2712_v23 = vmul.f32 0.70710677, %v2706_v20  ;;  %v2711_v27 = vmul.f32 0.5, %v2706_v20 }
 0xb24   : > { %v2708_v24 = vpop.f32.mrf.mxu0 }
 0xb25   : > { %3543 = verf.f32 %v2712_v23 }
 0xb26   : > { %v3415_v25 = vpop.f32.mrf.mxu0 }
 0xb32   : > { %v3544_v26 = vpop.eup %3543 }
 0xb33   : > { %v2714_v28 = vadd.f32 1.0, %v3544_v26 }
 0xb35   : > { %v2715_v30 = vmul.f32 %v2714_v28, %v2711_v27 }
 0xb37   : > { %v2716_v29 = vpack.c.bf16 %v2715_v30, %v2715_v30 }
 0xb39   : > { %3425 = vmatmul.mubr.msk.bf16.vlgmr.msra.gmra.mxu1 %vm2756_vm9, %v2716_v29 }
 0xbf9   : > { %v2794_v32 = vpop.f32.mrf.mxu1 }
 0xbfa   : > { %v2795_v33 = vadd.f32 %v3132_v31, %v2794_v32 }
 0xbfb   : > { %v3426_v34 = vpop.f32.mrf.mxu1  ;;  %2805 = sbr.rel (%p3138_p8) target bundleno = 3381 (0xd35), region = 124 }
 0xbfc   : > { %v2800_v35 = vadd.f32 %v2795_v33, %v2614_v62 }
 0xbfd   : > { %v2797_v36 = vpop.f32.mrf.mxu1 }
 0xbfe   : > { %2801 = vst.msk [vmem:[%s3819_s6] sm:$0xff] %vm1265_vm4, %v2800_v35 }
 0xbff   : > { %v3427_v37 = vpop.f32.mrf.mxu1 }
 0xc00   : > { %v2808_v38 = vsel %vm1265_vm4, %v2800_v35, 0.0  ;;  %v3139_v48 = vld [vmem:[%s4260_s10] ss:$0 sm:$0xff] }
 0xc01   : > { %2809 = vadd.xlane.f32.xlu0 %v2808_v38  ;;  %v3140_v50 = vld [vmem:[%s4261_s5] ss:$0 sm:$0xff] }
 0xc8a   : > { %v2810_v39 = vpop.xlane.xlu0 %2809 }
 0xc8b   : > { %v2811_v40 = vmul.f32 0.03125, %v2810_v39 }
 0xc8d   : > { %v2812_v41 = vsub.f32 %v2800_v35, %v2811_v40 }
 0xc8f   : > { %v2813_v42 = vmul.f32 %v2812_v41, %v2812_v41 }
 0xc91   : > { %v2814_v43 = vsel %vm1265_vm4, %v2813_v42, 0.0 }
 0xc92   : > { %2815 = vadd.xlane.f32.xlu0 %v2814_v43 }
 0xd1b   : > { %v2816_v44 = vpop.xlane.xlu0 %2815 }
 0xd1c   : > { %v2817_v45 = vmul.f32 0.03125, %v2816_v44 }
 0xd1e   : > { %v2818_v46 = vadd.f32 1e-05, %v2817_v45 }
 0xd20   : > { %3545 = vrsqrt.f32 %v2818_v46 }
 0xd2d   : > { %v3546_v47 = vpop.eup %3545 }
 0xd2e   : > { %v2820_v49 = vmul.f32 %v3546_v47, %v2812_v41 }
 0xd30   : > { %v2827_v51 = vmul.f32 %v3139_v48, %v2820_v49 }
 0xd32   : > { %v2834_v52 = vadd.f32 %v3140_v50, %v2827_v51 }
 0xd34   : > { %2835 = vst.msk [vmem:[%s3819_s6] sm:$0xff] %vm1265_vm4, %v2834_v52 }
 0xd35 PF: > { %s4262_s30 = sld [smem:[#allocation5_spill]] }
 0xd36   : > { %s4263_s5 = sld [smem:[#allocation3_spill]] }
 0xd37   : > { %s4264_s26 = sld [smem:[#allocation4_spill]] }
 0xd38   : > { %s4265_s27 = sld [smem:[#allocation6_spill]] }
 0xd39   : > { %s4266_s28 = sld [smem:[#allocation7_spill]] }
 0xd3b   : > { %s34_s6 = sadd.s32 1, %s4262_s30  }
 0xd3c   : > { %p31_p9 = scmp.ge.s32.totalorder %s34_s6, 6  }
 0xd3e   :  { %33 = sbr.rel (!%p31_p9) target bundleno = 18 (0x12), region = 193 }

</bundles_post_ra>
